<compile_context>
chip_gen: v5e
topology: v5e:2x2
jax: 0.10.0
libtpu: 0.0.40
codegen_flags: <defaults>
</compile_context>

<pallas_src>
import functools

import jax
import jax.numpy as jnp
from jax import lax
from jax.experimental import pallas as pl
from jax.experimental.pallas import tpu as pltpu

PAD = 2  # tail padding of each image's flattened spatial axis so the (dy=2, dx>0)
         # shifted slices never run past the end of the image


# --------------------------------- kernels ---------------------------------

def _conv3x3_acc(src_ref, wk_ref, *, W, n_rows):
    """sum_{dy,dx} wk[dy*3+dx] @ src[:, dy*W+dx : dy*W+dx + n_rows*W]  -> (Cout, n_rows*W)."""
    L = n_rows * W
    c_out = wk_ref.shape[1]
    acc = jnp.zeros((c_out, L), jnp.float32)
    for dy in range(3):
        for dx in range(3):
            w_k = wk_ref[dy * 3 + dx]                       # (Cout, Cin) bf16
            s_k = src_ref[:, pl.ds(dy * W + dx, L)]         # (Cin, L)    bf16
            acc += lax.dot_general(w_k, s_k, (((1,), (0,)), ((), ())),
                                   preferred_element_type=jnp.float32)
    return acc


def _masked_channel_stats(y, *, W, w_valid):
    """Per-channel sum / sum-of-squares over the valid columns of width-W rows."""
    col = lax.broadcasted_iota(jnp.int32, y.shape, 1)
    yv = jnp.where((col % W) < w_valid, y, 0.0)
    return (jnp.sum(yv, axis=1, keepdims=True),
            jnp.sum(yv * yv, axis=1, keepdims=True))


def conv_stats_kernel(x_ref, wk_ref, y_ref, sum_ref, sq_ref, *, W, h_out, w_out):
    """One image: 3x3 valid conv (bias folded away) + per-channel batch-stat partials.

    x_ref  : (Cin, H*W + PAD)       bf16   flattened input image (zero tail)
    wk_ref : (9, Cout, Cin)         bf16   wk_ref[dy*3+dx] = w[:, :, dy, dx]
    y_ref  : (Cout, h_out*W + PAD)  bf16   pre-BN conv output in width-W rows
                                           (cols >= w_out of each row are junk, tail = 0)
    sum_ref/sq_ref : (Cout, 1)      f32    per-image masked partial statistics
    """
    L = h_out * W
    acc = _conv3x3_acc(x_ref, wk_ref, W=W, n_rows=h_out)
    s, sq = _masked_channel_stats(acc, W=W, w_valid=w_out)
    sum_ref[...] = s
    sq_ref[...] = sq
    y_ref[:, pl.ds(0, L)] = acc.astype(y_ref.dtype)
    y_ref[:, pl.ds(L, PAD)] = jnp.zeros((acc.shape[0], PAD), y_ref.dtype)


def bn_relu_conv_stats_kernel(y1_ref, scale_ref, shift_ref, wk_ref,
                              y2_ref, sum_ref, sq_ref, a_ref, *, W, h_out, w_out):
    """One image: fused BN(scale,shift)+ReLU of conv1 output, then the second 3x3 conv
    + per-channel batch-stat partials.

    y1_ref : (C, h1*W + PAD) bf16   pre-BN output of conv1
    scale_ref/shift_ref : (C, 1) f32
    wk_ref : (9, C, C) bf16
    y2_ref : (C, h_out*W) bf16      pre-BN output of conv2 (width-W rows)
    a_ref  : VMEM scratch (C, h1*W + PAD) bf16 post-BN/ReLU activation
    """
    a = jnp.maximum(y1_ref[...].astype(jnp.float32) * scale_ref[...] + shift_ref[...], 0.0)
    a_ref[...] = a.astype(a_ref.dtype)
    acc = _conv3x3_acc(a_ref, wk_ref, W=W, n_rows=h_out)
    s, sq = _masked_channel_stats(acc, W=W, w_valid=w_out)
    sum_ref[...] = s
    sq_ref[...] = sq
    y2_ref[...] = acc.astype(y2_ref.dtype)


def bn_relu_kernel(y_ref, scale_ref, shift_ref, o_ref):
    o_ref[...] = jnp.maximum(
        y_ref[...].astype(jnp.float32) * scale_ref[...] + shift_ref[...], 0.0)


# ----------------------------- pallas_call wrappers -------------------------

def _conv1_call(xs, wk, *, W, h_out, w_out):
    N, c_in, s_in = xs.shape
    c_out = wk.shape[1]
    s_out = h_out * W + PAD
    kern = functools.partial(conv_stats_kernel, W=W, h_out=h_out, w_out=w_out)
    return pl.pallas_call(
        kern,
        out_shape=(
            jax.ShapeDtypeStruct((N, c_out, s_out), jnp.bfloat16),
            jax.ShapeDtypeStruct((N, c_out, 1), jnp.float32),
            jax.ShapeDtypeStruct((N, c_out, 1), jnp.float32),
        ),
        grid=(N,),
        in_specs=[
            pl.BlockSpec((None, c_in, s_in), lambda n: (n, 0, 0)),
            pl.BlockSpec((9, c_out, c_in), lambda n: (0, 0, 0)),
        ],
        out_specs=(
            pl.BlockSpec((None, c_out, s_out), lambda n: (n, 0, 0)),
            pl.BlockSpec((None, c_out, 1), lambda n: (n, 0, 0)),
            pl.BlockSpec((None, c_out, 1), lambda n: (n, 0, 0)),
        ),
        compiler_params=pltpu.CompilerParams(dimension_semantics=("parallel",)),
    )(xs, wk)


def _conv2_call(y1, scale, shift, wk, *, W, h_out, w_out):
    N, c_in, s_in = y1.shape
    c_out = wk.shape[1]
    s_out = h_out * W
    kern = functools.partial(bn_relu_conv_stats_kernel, W=W, h_out=h_out, w_out=w_out)
    return pl.pallas_call(
        kern,
        out_shape=(
            jax.ShapeDtypeStruct((N, c_out, s_out), jnp.bfloat16),
            jax.ShapeDtypeStruct((N, c_out, 1), jnp.float32),
            jax.ShapeDtypeStruct((N, c_out, 1), jnp.float32),
        ),
        grid=(N,),
        in_specs=[
            pl.BlockSpec((None, c_in, s_in), lambda n: (n, 0, 0)),
            pl.BlockSpec((c_in, 1), lambda n: (0, 0)),
            pl.BlockSpec((c_in, 1), lambda n: (0, 0)),
            pl.BlockSpec((9, c_out, c_in), lambda n: (0, 0, 0)),
        ],
        out_specs=(
            pl.BlockSpec((None, c_out, s_out), lambda n: (n, 0, 0)),
            pl.BlockSpec((None, c_out, 1), lambda n: (n, 0, 0)),
            pl.BlockSpec((None, c_out, 1), lambda n: (n, 0, 0)),
        ),
        scratch_shapes=[pltpu.VMEM((c_in, s_in), jnp.bfloat16)],
        compiler_params=pltpu.CompilerParams(dimension_semantics=("parallel",)),
    )(y1, scale, shift, wk)


def _bn_relu_call(y, scale, shift):
    N, c, s = y.shape
    return pl.pallas_call(
        bn_relu_kernel,
        out_shape=jax.ShapeDtypeStruct((N, c, s), jnp.float32),
        grid=(N,),
        in_specs=[
            pl.BlockSpec((None, c, s), lambda n: (n, 0, 0)),
            pl.BlockSpec((c, 1), lambda n: (0, 0)),
            pl.BlockSpec((c, 1), lambda n: (0, 0)),
        ],
        out_specs=pl.BlockSpec((None, c, s), lambda n: (n, 0, 0)),
        compiler_params=pltpu.CompilerParams(dimension_semantics=("parallel",)),
    )(y, scale, shift)


# ------------------------------ DoubleConv forward ---------------------------

def double_conv_forward(x, params, eps=1e-5):
    """PyTorch DoubleConv forward (training-mode BatchNorm batch statistics).

    x: (N, C_in, H, W) float32 NCHW.  Returns (N, C_out, H-4, W-4) float32 NCHW.
    """
    N, c_in, H, W = x.shape
    c_out = params["w1"].shape[0]
    h1, w1 = H - 2, W - 2
    h2, w2 = H - 4, W - 4

    # Lane-dense flattened-CHW layout (reshape only - no NCHW<->NHWC transpose), +2-elem
    # tail so every shifted 3x3 slice stays in bounds, bf16 operands for the MXU.
    xs = jnp.pad(x.reshape(N, c_in, H * W), ((0, 0), (0, 0), (0, PAD))).astype(jnp.bfloat16)
    wk1 = jnp.transpose(params["w1"], (2, 3, 0, 1)).reshape(9, c_out, c_in).astype(jnp.bfloat16)
    wk2 = jnp.transpose(params["w2"], (2, 3, 0, 1)).reshape(9, c_out, c_out).astype(jnp.bfloat16)

    def bn_scale_shift(part_sum, part_sq, count, gamma, beta):
        mean = jnp.sum(part_sum, axis=0)[:, 0] / count
        var = jnp.sum(part_sq, axis=0)[:, 0] / count - mean * mean
        var = jnp.maximum(var, 0.0)                     # guard E[x^2]-E[x]^2 cancellation
        inv = gamma * lax.rsqrt(var + eps)
        return (inv.reshape(-1, 1).astype(jnp.float32),
                (beta - mean * inv).reshape(-1, 1).astype(jnp.float32))

    # conv1 (+ batch stats). The conv bias cancels under train-mode BN, so it is folded
    # away entirely (params["b1"]/["b2"] have no effect on the module output).
    y1, s1, q1 = _conv1_call(xs, wk1, W=W, h_out=h1, w_out=w1)
    scale1, shift1 = bn_scale_shift(s1, q1, N * h1 * w1, params["g1"], params["be1"])

    # BN1 + ReLU fused into conv2 (+ batch stats).
    y2, s2, q2 = _conv2_call(y1, scale1, shift1, wk2, W=W, h_out=h2, w_out=w2)
    scale2, shift2 = bn_scale_shift(s2, q2, N * h2 * w2, params["g2"], params["be2"])

    # BN2 + ReLU, then crop the junk columns of the width-W rows -> dense NCHW output.
    out = _bn_relu_call(y2, scale2, shift2)             # (N, C, h2*W) f32
    return out.reshape(N, c_out, h2, W)[:, :, :, :w2]


# ------------------------------ pure-JAX reference ---------------------------

def double_conv_reference(x, params, eps=1e-5):
    """Pure-JAX reference with PyTorch DoubleConv semantics (train-mode BatchNorm)."""
    def conv_bn_relu(h, w, b, g, be):
        y = lax.conv_general_dilated(h, w, (1, 1), "VALID",
                                     dimension_numbers=("NCHW", "OIHW", "NCHW"))
        y = y + b[None, :, None, None]
        mean = jnp.mean(y, axis=(0, 2, 3))
        var = jnp.var(y, axis=(0, 2, 3))                # biased, as in PyTorch train mode
        yn = (y - mean[None, :, None, None]) * (g * lax.rsqrt(var + eps))[None, :, None, None]
        return jnp.maximum(yn + be[None, :, None, None], 0.0)

    h = conv_bn_relu(x, params["w1"], params["b1"], params["g1"], params["be1"])
    return conv_bn_relu(h, params["w2"], params["b2"], params["g2"], params["be2"])


if __name__ == "__main__":
    keys = jax.random.split(jax.random.PRNGKey(0), 9)
    N, c_in, c_out, H, W = 2, 4, 8, 16, 16
    params = dict(
        w1=jax.random.normal(keys[0], (c_out, c_in, 3, 3), jnp.float32) / jnp.sqrt(9 * c_in),
        b1=0.1 * jax.random.normal(keys[1], (c_out,), jnp.float32),
        g1=1.0 + 0.1 * jax.random.normal(keys[2], (c_out,), jnp.float32),
        be1=0.1 * jax.random.normal(keys[3], (c_out,), jnp.float32),
        w2=jax.random.normal(keys[4], (c_out, c_out, 3, 3), jnp.float32) / jnp.sqrt(9 * c_out),
        b2=0.1 * jax.random.normal(keys[5], (c_out,), jnp.float32),
        g2=1.0 + 0.1 * jax.random.normal(keys[6], (c_out,), jnp.float32),
        be2=0.1 * jax.random.normal(keys[7], (c_out,), jnp.float32),
    )
    x = jax.random.normal(keys[8], (N, c_in, H, W), jnp.float32)

    fwd = jax.jit(double_conv_forward)
    out = fwd(x, params)
    jax.block_until_ready(out)
    assert out.shape == (N, c_out, H - 4, W - 4), out.shape
    assert bool(jnp.all(jnp.isfinite(out)))

    # Correctness check: reference gets the same bf16-rounded conv operands the kernels use
    # (remaining deltas = bf16 intermediates + accumulation order).
    ref_params = dict(params)
    ref_params["w1"] = params["w1"].astype(jnp.bfloat16).astype(jnp.float32)
    ref_params["w2"] = params["w2"].astype(jnp.bfloat16).astype(jnp.float32)
    ref = double_conv_reference(x.astype(jnp.bfloat16).astype(jnp.float32), ref_params)
    assert bool(jnp.allclose(out, ref, atol=5e-2, rtol=5e-2)), \
        float(jnp.max(jnp.abs(out - ref)))

    print("KERNEL_OK")
</pallas_src>

<mosaic_0001>
module attributes {stable_mosaic.version = 11 : i64} {
  func.func @conv_stats_kernel(%arg0: i32, %arg1: memref<1x4x258xbf16, #tpu.memory_space<vmem>>, %arg2: memref<9x8x4xbf16, #tpu.memory_space<vmem>>, %arg3: memref<1x8x226xbf16, #tpu.memory_space<vmem>>, %arg4: memref<1x8x1xf32, #tpu.memory_space<vmem>>, %arg5: memref<1x8x1xf32, #tpu.memory_space<vmem>>) attributes {dimension_semantics = [#tpu.dimension_semantics<parallel>], iteration_bounds = array<i64: 2>, scalar_prefetch = 0 : i64, scratch_operands = 0 : i64, tpu.core_type = #tpu.core_type<tc>, window_params = [{transform_indices = @transform_0, window_bounds = array<i64: 1, 4, 258>}, {pipeline_mode = #tpu.pipeline_mode<synchronous>, transform_indices = @transform_1, window_bounds = array<i64: 9, 8, 4>}, {transform_indices = @transform_2, window_bounds = array<i64: 1, 8, 226>}, {transform_indices = @transform_3, window_bounds = array<i64: 1, 8, 1>}, {transform_indices = @transform_4, window_bounds = array<i64: 1, 8, 1>}]} {
    %cst = arith.constant 0.000000e+00 : f32
    %0 = vector.broadcast %cst : f32 to vector<8x224xf32>
    %c0 = arith.constant 0 : index
    %c0_0 = arith.constant 0 : index
    %c0_1 = arith.constant 0 : index
    %1 = vector.load %arg2[%c0, %c0_0, %c0_1] : memref<9x8x4xbf16, #tpu.memory_space<vmem>>, vector<1x8x4xbf16>
    %2 = vector.shape_cast %1 : vector<1x8x4xbf16> to vector<8x4xbf16>
    %c0_2 = arith.constant 0 : index
    %c0_3 = arith.constant 0 : index
    %c0_4 = arith.constant 0 : index
    %3 = vector.load %arg1[%c0_2, %c0_3, %c0_4] : memref<1x4x258xbf16, #tpu.memory_space<vmem>>, vector<1x4x224xbf16>
    %4 = vector.shape_cast %3 : vector<1x4x224xbf16> to vector<4x224xbf16>
    %cst_5 = arith.constant dense<0.000000e+00> : vector<8x224xf32>
    %5 = tpu.matmul %2, %4, %cst_5 {dimension_numbers = #tpu.dot_dimension_numbers<[1], [0], [0], [1], [0, 0, 1, 1], [], []>} : vector<8x4xbf16>, vector<4x224xbf16>, vector<8x224xf32> -> vector<8x224xf32>
    %6 = arith.addf %0, %5 : vector<8x224xf32>
    %c1 = arith.constant 1 : index
    %c0_6 = arith.constant 0 : index
    %c0_7 = arith.constant 0 : index
    %7 = vector.load %arg2[%c1, %c0_6, %c0_7] : memref<9x8x4xbf16, #tpu.memory_space<vmem>>, vector<1x8x4xbf16>
    %8 = vector.shape_cast %7 : vector<1x8x4xbf16> to vector<8x4xbf16>
    %c0_8 = arith.constant 0 : index
    %c0_9 = arith.constant 0 : index
    %c1_10 = arith.constant 1 : index
    %9 = vector.load %arg1[%c0_8, %c0_9, %c1_10] : memref<1x4x258xbf16, #tpu.memory_space<vmem>>, vector<1x4x224xbf16>
    %10 = vector.shape_cast %9 : vector<1x4x224xbf16> to vector<4x224xbf16>
    %cst_11 = arith.constant dense<0.000000e+00> : vector<8x224xf32>
    %11 = tpu.matmul %8, %10, %cst_11 {dimension_numbers = #tpu.dot_dimension_numbers<[1], [0], [0], [1], [0, 0, 1, 1], [], []>} : vector<8x4xbf16>, vector<4x224xbf16>, vector<8x224xf32> -> vector<8x224xf32>
    %12 = arith.addf %6, %11 : vector<8x224xf32>
    %c2 = arith.constant 2 : index
    %c0_12 = arith.constant 0 : index
    %c0_13 = arith.constant 0 : index
    %13 = vector.load %arg2[%c2, %c0_12, %c0_13] : memref<9x8x4xbf16, #tpu.memory_space<vmem>>, vector<1x8x4xbf16>
    %14 = vector.shape_cast %13 : vector<1x8x4xbf16> to vector<8x4xbf16>
    %c0_14 = arith.constant 0 : index
    %c0_15 = arith.constant 0 : index
    %c2_16 = arith.constant 2 : index
    %15 = vector.load %arg1[%c0_14, %c0_15, %c2_16] : memref<1x4x258xbf16, #tpu.memory_space<vmem>>, vector<1x4x224xbf16>
    %16 = vector.shape_cast %15 : vector<1x4x224xbf16> to vector<4x224xbf16>
    %cst_17 = arith.constant dense<0.000000e+00> : vector<8x224xf32>
    %17 = tpu.matmul %14, %16, %cst_17 {dimension_numbers = #tpu.dot_dimension_numbers<[1], [0], [0], [1], [0, 0, 1, 1], [], []>} : vector<8x4xbf16>, vector<4x224xbf16>, vector<8x224xf32> -> vector<8x224xf32>
    %18 = arith.addf %12, %17 : vector<8x224xf32>
    %c3 = arith.constant 3 : index
    %c0_18 = arith.constant 0 : index
    %c0_19 = arith.constant 0 : index
    %19 = vector.load %arg2[%c3, %c0_18, %c0_19] : memref<9x8x4xbf16, #tpu.memory_space<vmem>>, vector<1x8x4xbf16>
    %20 = vector.shape_cast %19 : vector<1x8x4xbf16> to vector<8x4xbf16>
    %c0_20 = arith.constant 0 : index
    %c0_21 = arith.constant 0 : index
    %c16 = arith.constant 16 : index
    %21 = vector.load %arg1[%c0_20, %c0_21, %c16] : memref<1x4x258xbf16, #tpu.memory_space<vmem>>, vector<1x4x224xbf16>
    %22 = vector.shape_cast %21 : vector<1x4x224xbf16> to vector<4x224xbf16>
    %cst_22 = arith.constant dense<0.000000e+00> : vector<8x224xf32>
    %23 = tpu.matmul %20, %22, %cst_22 {dimension_numbers = #tpu.dot_dimension_numbers<[1], [0], [0], [1], [0, 0, 1, 1], [], []>} : vector<8x4xbf16>, vector<4x224xbf16>, vector<8x224xf32> -> vector<8x224xf32>
    %24 = arith.addf %18, %23 : vector<8x224xf32>
    %c4 = arith.constant 4 : index
    %c0_23 = arith.constant 0 : index
    %c0_24 = arith.constant 0 : index
    %25 = vector.load %arg2[%c4, %c0_23, %c0_24] : memref<9x8x4xbf16, #tpu.memory_space<vmem>>, vector<1x8x4xbf16>
    %26 = vector.shape_cast %25 : vector<1x8x4xbf16> to vector<8x4xbf16>
    %c0_25 = arith.constant 0 : index
    %c0_26 = arith.constant 0 : index
    %c17 = arith.constant 17 : index
    %27 = vector.load %arg1[%c0_25, %c0_26, %c17] : memref<1x4x258xbf16, #tpu.memory_space<vmem>>, vector<1x4x224xbf16>
    %28 = vector.shape_cast %27 : vector<1x4x224xbf16> to vector<4x224xbf16>
    %cst_27 = arith.constant dense<0.000000e+00> : vector<8x224xf32>
    %29 = tpu.matmul %26, %28, %cst_27 {dimension_numbers = #tpu.dot_dimension_numbers<[1], [0], [0], [1], [0, 0, 1, 1], [], []>} : vector<8x4xbf16>, vector<4x224xbf16>, vector<8x224xf32> -> vector<8x224xf32>
    %30 = arith.addf %24, %29 : vector<8x224xf32>
    %c5 = arith.constant 5 : index
    %c0_28 = arith.constant 0 : index
    %c0_29 = arith.constant 0 : index
    %31 = vector.load %arg2[%c5, %c0_28, %c0_29] : memref<9x8x4xbf16, #tpu.memory_space<vmem>>, vector<1x8x4xbf16>
    %32 = vector.shape_cast %31 : vector<1x8x4xbf16> to vector<8x4xbf16>
    %c0_30 = arith.constant 0 : index
    %c0_31 = arith.constant 0 : index
    %c18 = arith.constant 18 : index
    %33 = vector.load %arg1[%c0_30, %c0_31, %c18] : memref<1x4x258xbf16, #tpu.memory_space<vmem>>, vector<1x4x224xbf16>
    %34 = vector.shape_cast %33 : vector<1x4x224xbf16> to vector<4x224xbf16>
    %cst_32 = arith.constant dense<0.000000e+00> : vector<8x224xf32>
    %35 = tpu.matmul %32, %34, %cst_32 {dimension_numbers = #tpu.dot_dimension_numbers<[1], [0], [0], [1], [0, 0, 1, 1], [], []>} : vector<8x4xbf16>, vector<4x224xbf16>, vector<8x224xf32> -> vector<8x224xf32>
    %36 = arith.addf %30, %35 : vector<8x224xf32>
    %c6 = arith.constant 6 : index
    %c0_33 = arith.constant 0 : index
    %c0_34 = arith.constant 0 : index
    %37 = vector.load %arg2[%c6, %c0_33, %c0_34] : memref<9x8x4xbf16, #tpu.memory_space<vmem>>, vector<1x8x4xbf16>
    %38 = vector.shape_cast %37 : vector<1x8x4xbf16> to vector<8x4xbf16>
    %c0_35 = arith.constant 0 : index
    %c0_36 = arith.constant 0 : index
    %c32 = arith.constant 32 : index
    %39 = vector.load %arg1[%c0_35, %c0_36, %c32] : memref<1x4x258xbf16, #tpu.memory_space<vmem>>, vector<1x4x224xbf16>
    %40 = vector.shape_cast %39 : vector<1x4x224xbf16> to vector<4x224xbf16>
    %cst_37 = arith.constant dense<0.000000e+00> : vector<8x224xf32>
    %41 = tpu.matmul %38, %40, %cst_37 {dimension_numbers = #tpu.dot_dimension_numbers<[1], [0], [0], [1], [0, 0, 1, 1], [], []>} : vector<8x4xbf16>, vector<4x224xbf16>, vector<8x224xf32> -> vector<8x224xf32>
    %42 = arith.addf %36, %41 : vector<8x224xf32>
    %c7 = arith.constant 7 : index
    %c0_38 = arith.constant 0 : index
    %c0_39 = arith.constant 0 : index
    %43 = vector.load %arg2[%c7, %c0_38, %c0_39] : memref<9x8x4xbf16, #tpu.memory_space<vmem>>, vector<1x8x4xbf16>
    %44 = vector.shape_cast %43 : vector<1x8x4xbf16> to vector<8x4xbf16>
    %c0_40 = arith.constant 0 : index
    %c0_41 = arith.constant 0 : index
    %c33 = arith.constant 33 : index
    %45 = vector.load %arg1[%c0_40, %c0_41, %c33] : memref<1x4x258xbf16, #tpu.memory_space<vmem>>, vector<1x4x224xbf16>
    %46 = vector.shape_cast %45 : vector<1x4x224xbf16> to vector<4x224xbf16>
    %cst_42 = arith.constant dense<0.000000e+00> : vector<8x224xf32>
    %47 = tpu.matmul %44, %46, %cst_42 {dimension_numbers = #tpu.dot_dimension_numbers<[1], [0], [0], [1], [0, 0, 1, 1], [], []>} : vector<8x4xbf16>, vector<4x224xbf16>, vector<8x224xf32> -> vector<8x224xf32>
    %48 = arith.addf %42, %47 : vector<8x224xf32>
    %c8 = arith.constant 8 : index
    %c0_43 = arith.constant 0 : index
    %c0_44 = arith.constant 0 : index
    %49 = vector.load %arg2[%c8, %c0_43, %c0_44] : memref<9x8x4xbf16, #tpu.memory_space<vmem>>, vector<1x8x4xbf16>
    %50 = vector.shape_cast %49 : vector<1x8x4xbf16> to vector<8x4xbf16>
    %c0_45 = arith.constant 0 : index
    %c0_46 = arith.constant 0 : index
    %c34 = arith.constant 34 : index
    %51 = vector.load %arg1[%c0_45, %c0_46, %c34] : memref<1x4x258xbf16, #tpu.memory_space<vmem>>, vector<1x4x224xbf16>
    %52 = vector.shape_cast %51 : vector<1x4x224xbf16> to vector<4x224xbf16>
    %cst_47 = arith.constant dense<0.000000e+00> : vector<8x224xf32>
    %53 = tpu.matmul %50, %52, %cst_47 {dimension_numbers = #tpu.dot_dimension_numbers<[1], [0], [0], [1], [0, 0, 1, 1], [], []>} : vector<8x4xbf16>, vector<4x224xbf16>, vector<8x224xf32> -> vector<8x224xf32>
    %54 = arith.addf %48, %53 : vector<8x224xf32>
    %55 = tpu.iota {dimensions = array<i32: 1>} : vector<8x224xi32>
    %c16_i32 = arith.constant 16 : i32
    %c0_i32 = arith.constant 0 : i32
    %56 = arith.cmpi eq, %c16_i32, %c0_i32 : i32
    %c1_i32 = arith.constant 1 : i32
    %57 = arith.select %56, %c1_i32, %c16_i32 : i32
    %58 = vector.broadcast %57 : i32 to vector<8x224xi32>
    %59 = arith.remsi %55, %58 : vector<8x224xi32>
    %c0_i32_48 = arith.constant 0 : i32
    %60 = vector.broadcast %c0_i32_48 : i32 to vector<8x224xi32>
    %61 = arith.cmpi ne, %59, %60 : vector<8x224xi32>
    %c0_i32_49 = arith.constant 0 : i32
    %62 = vector.broadcast %c0_i32_49 : i32 to vector<8x224xi32>
    %63 = arith.cmpi slt, %59, %62 : vector<8x224xi32>
    %c0_i32_50 = arith.constant 0 : i32
    %64 = arith.cmpi slt, %57, %c0_i32_50 : i32
    %65 = vector.broadcast %64 : i1 to vector<8x224xi1>
    %66 = vector.broadcast %65 : vector<8x224xi1> to vector<8x224xi1>
    %67 = arith.xori %63, %66 : vector<8x224xi1>
    %68 = arith.andi %67, %61 : vector<8x224xi1>
    %69 = vector.broadcast %57 : i32 to vector<8x224xi32>
    %70 = arith.addi %59, %69 : vector<8x224xi32>
    %71 = arith.select %68, %70, %59 : vector<8x224xi1>, vector<8x224xi32>
    %c14_i32 = arith.constant 14 : i32
    %72 = vector.broadcast %c14_i32 : i32 to vector<8x224xi32>
    %73 = arith.cmpi slt, %71, %72 : vector<8x224xi32>
    %cst_51 = arith.constant 0.000000e+00 : f32
    %74 = vector.broadcast %cst_51 : f32 to vector<8x224xf32>
    %75 = arith.select %73, %54, %74 : vector<8x224xi1>, vector<8x224xf32>
    %cst_52 = arith.constant dense<0.000000e+00> : vector<8xf32>
    %76 = vector.multi_reduction <add>, %75, %cst_52 [1] : vector<8x224xf32> to vector<8xf32>
    %77 = vector.shape_cast %76 : vector<8xf32> to vector<8x1xf32>
    %78 = arith.mulf %75, %75 : vector<8x224xf32>
    %cst_53 = arith.constant dense<0.000000e+00> : vector<8xf32>
    %79 = vector.multi_reduction <add>, %78, %cst_53 [1] : vector<8x224xf32> to vector<8xf32>
    %80 = vector.shape_cast %79 : vector<8xf32> to vector<8x1xf32>
    %c0_54 = arith.constant 0 : index
    %c0_55 = arith.constant 0 : index
    %c0_56 = arith.constant 0 : index
    %81 = vector.load %arg4[%c0_54, %c0_55, %c0_56] : memref<1x8x1xf32, #tpu.memory_space<vmem>>, vector<1x8x1xf32>
    %82 = vector.shape_cast %81 : vector<1x8x1xf32> to vector<8x1xf32>
    %83 = vector.shape_cast %77 : vector<8x1xf32> to vector<1x8x1xf32>
    tpu.vector_store %arg4[%c0_54, %c0_55, %c0_56], %83 {strides = array<i32>} : memref<1x8x1xf32, #tpu.memory_space<vmem>>, vector<1x8x1xf32>,
    %c0_57 = arith.constant 0 : index
    %c0_58 = arith.constant 0 : index
    %c0_59 = arith.constant 0 : index
    %84 = vector.load %arg5[%c0_57, %c0_58, %c0_59] : memref<1x8x1xf32, #tpu.memory_space<vmem>>, vector<1x8x1xf32>
    %85 = vector.shape_cast %84 : vector<1x8x1xf32> to vector<8x1xf32>
    %86 = vector.shape_cast %80 : vector<8x1xf32> to vector<1x8x1xf32>
    tpu.vector_store %arg5[%c0_57, %c0_58, %c0_59], %86 {strides = array<i32>} : memref<1x8x1xf32, #tpu.memory_space<vmem>>, vector<1x8x1xf32>,
    %87 = arith.truncf %54 : vector<8x224xf32> to vector<8x224xbf16>
    %c0_60 = arith.constant 0 : index
    %c0_61 = arith.constant 0 : index
    %c0_62 = arith.constant 0 : index
    %88 = vector.load %arg3[%c0_60, %c0_61, %c0_62] : memref<1x8x226xbf16, #tpu.memory_space<vmem>>, vector<1x8x224xbf16>
    %89 = vector.shape_cast %88 : vector<1x8x224xbf16> to vector<8x224xbf16>
    %90 = vector.shape_cast %87 : vector<8x224xbf16> to vector<1x8x224xbf16>
    tpu.vector_store %arg3[%c0_60, %c0_61, %c0_62], %90 {strides = array<i32>} : memref<1x8x226xbf16, #tpu.memory_space<vmem>>, vector<1x8x224xbf16>,
    %cst_63 = arith.constant 0.000000e+00 : bf16
    %91 = vector.broadcast %cst_63 : bf16 to vector<8x2xbf16>
    %c0_64 = arith.constant 0 : index
    %c0_65 = arith.constant 0 : index
    %c224 = arith.constant 224 : index
    %92 = vector.load %arg3[%c0_64, %c0_65, %c224] : memref<1x8x226xbf16, #tpu.memory_space<vmem>>, vector<1x8x2xbf16>
    %93 = vector.shape_cast %92 : vector<1x8x2xbf16> to vector<8x2xbf16>
    %94 = vector.shape_cast %91 : vector<8x2xbf16> to vector<1x8x2xbf16>
    tpu.vector_store %arg3[%c0_64, %c0_65, %c224], %94 {strides = array<i32>} : memref<1x8x226xbf16, #tpu.memory_space<vmem>>, vector<1x8x2xbf16>,
    return
  }
  func.func @transform_0(%arg0: i32) -> (i32, i32, i32) {
    %c0_i32 = arith.constant 0 : i32
    %c0_i32_0 = arith.constant 0 : i32
    %c0_i32_1 = arith.constant 0 : i32
    return %arg0, %c0_i32, %c0_i32_0 : i32, i32, i32
  }
  func.func @transform_1(%arg0: i32) -> (i32, i32, i32) {
    %c0_i32 = arith.constant 0 : i32
    %c0_i32_0 = arith.constant 0 : i32
    %c0_i32_1 = arith.constant 0 : i32
    %c0_i32_2 = arith.constant 0 : i32
    return %c0_i32, %c0_i32_0, %c0_i32_1 : i32, i32, i32
  }
  func.func @transform_2(%arg0: i32) -> (i32, i32, i32) {
    %c0_i32 = arith.constant 0 : i32
    %c0_i32_0 = arith.constant 0 : i32
    %c0_i32_1 = arith.constant 0 : i32
    return %arg0, %c0_i32, %c0_i32_0 : i32, i32, i32
  }
  func.func @transform_3(%arg0: i32) -> (i32, i32, i32) {
    %c0_i32 = arith.constant 0 : i32
    %c0_i32_0 = arith.constant 0 : i32
    %c0_i32_1 = arith.constant 0 : i32
    return %arg0, %c0_i32, %c0_i32_0 : i32, i32, i32
  }
  func.func @transform_4(%arg0: i32) -> (i32, i32, i32) {
    %c0_i32 = arith.constant 0 : i32
    %c0_i32_0 = arith.constant 0 : i32
    %c0_i32_1 = arith.constant 0 : i32
    return %arg0, %c0_i32, %c0_i32_0 : i32, i32, i32
  }
}

module attributes {stable_mosaic.version = 11 : i64} {
  func.func @bn_relu_conv_stats_kernel(%arg0: i32, %arg1: memref<1x8x226xbf16, #tpu.memory_space<vmem>>, %arg2: memref<8x1xf32, #tpu.memory_space<vmem>>, %arg3: memref<8x1xf32, #tpu.memory_space<vmem>>, %arg4: memref<9x8x8xbf16, #tpu.memory_space<vmem>>, %arg5: memref<1x8x192xbf16, #tpu.memory_space<vmem>>, %arg6: memref<1x8x1xf32, #tpu.memory_space<vmem>>, %arg7: memref<1x8x1xf32, #tpu.memory_space<vmem>>, %arg8: memref<8x226xbf16, #tpu.memory_space<vmem>>) attributes {dimension_semantics = [#tpu.dimension_semantics<parallel>], iteration_bounds = array<i64: 2>, scalar_prefetch = 0 : i64, scratch_operands = 1 : i64, tpu.core_type = #tpu.core_type<tc>, window_params = [{transform_indices = @transform_0, window_bounds = array<i64: 1, 8, 226>}, {pipeline_mode = #tpu.pipeline_mode<synchronous>, transform_indices = @transform_1, window_bounds = array<i64: 8, 1>}, {pipeline_mode = #tpu.pipeline_mode<synchronous>, transform_indices = @transform_2, window_bounds = array<i64: 8, 1>}, {pipeline_mode = #tpu.pipeline_mode<synchronous>, transform_indices = @transform_3, window_bounds = array<i64: 9, 8, 8>}, {transform_indices = @transform_4, window_bounds = array<i64: 1, 8, 192>}, {transform_indices = @transform_5, window_bounds = array<i64: 1, 8, 1>}, {transform_indices = @transform_6, window_bounds = array<i64: 1, 8, 1>}]} {
    %c0 = arith.constant 0 : index
    %c0_0 = arith.constant 0 : index
    %c0_1 = arith.constant 0 : index
    %0 = vector.load %arg1[%c0, %c0_0, %c0_1] : memref<1x8x226xbf16, #tpu.memory_space<vmem>>, vector<1x8x226xbf16>
    %1 = vector.shape_cast %0 : vector<1x8x226xbf16> to vector<8x226xbf16>
    %2 = arith.extf %1 : vector<8x226xbf16> to vector<8x226xf32>
    %c0_2 = arith.constant 0 : index
    %c0_3 = arith.constant 0 : index
    %3 = vector.load %arg2[%c0_2, %c0_3] : memref<8x1xf32, #tpu.memory_space<vmem>>, vector<8x1xf32>
    %4 = vector.broadcast %3 : vector<8x1xf32> to vector<8x226xf32>
    %5 = arith.mulf %2, %4 : vector<8x226xf32>
    %c0_4 = arith.constant 0 : index
    %c0_5 = arith.constant 0 : index
    %6 = vector.load %arg3[%c0_4, %c0_5] : memref<8x1xf32, #tpu.memory_space<vmem>>, vector<8x1xf32>
    %7 = vector.broadcast %6 : vector<8x1xf32> to vector<8x226xf32>
    %8 = arith.addf %5, %7 : vector<8x226xf32>
    %cst = arith.constant 0.000000e+00 : f32
    %9 = vector.broadcast %cst : f32 to vector<8x226xf32>
    %10 = arith.maximumf %8, %9 : vector<8x226xf32>
    %11 = arith.truncf %10 : vector<8x226xf32> to vector<8x226xbf16>
    %c0_6 = arith.constant 0 : index
    %c0_7 = arith.constant 0 : index
    %12 = vector.load %arg8[%c0_6, %c0_7] : memref<8x226xbf16, #tpu.memory_space<vmem>>, vector<8x226xbf16>
    tpu.vector_store %arg8[%c0_6, %c0_7], %11 {strides = array<i32>} : memref<8x226xbf16, #tpu.memory_space<vmem>>, vector<8x226xbf16>,
    %cst_8 = arith.constant 0.000000e+00 : f32
    %13 = vector.broadcast %cst_8 : f32 to vector<8x192xf32>
    %c0_9 = arith.constant 0 : index
    %c0_10 = arith.constant 0 : index
    %c0_11 = arith.constant 0 : index
    %14 = vector.load %arg4[%c0_9, %c0_10, %c0_11] : memref<9x8x8xbf16, #tpu.memory_space<vmem>>, vector<1x8x8xbf16>
    %15 = vector.shape_cast %14 : vector<1x8x8xbf16> to vector<8x8xbf16>
    %c0_12 = arith.constant 0 : index
    %c0_13 = arith.constant 0 : index
    %16 = vector.load %arg8[%c0_12, %c0_13] : memref<8x226xbf16, #tpu.memory_space<vmem>>, vector<8x192xbf16>
    %cst_14 = arith.constant dense<0.000000e+00> : vector<8x192xf32>
    %17 = tpu.matmul %15, %16, %cst_14 {dimension_numbers = #tpu.dot_dimension_numbers<[1], [0], [0], [1], [0, 0, 1, 1], [], []>} : vector<8x8xbf16>, vector<8x192xbf16>, vector<8x192xf32> -> vector<8x192xf32>
    %18 = arith.addf %13, %17 : vector<8x192xf32>
    %c1 = arith.constant 1 : index
    %c0_15 = arith.constant 0 : index
    %c0_16 = arith.constant 0 : index
    %19 = vector.load %arg4[%c1, %c0_15, %c0_16] : memref<9x8x8xbf16, #tpu.memory_space<vmem>>, vector<1x8x8xbf16>
    %20 = vector.shape_cast %19 : vector<1x8x8xbf16> to vector<8x8xbf16>
    %c0_17 = arith.constant 0 : index
    %c1_18 = arith.constant 1 : index
    %21 = vector.load %arg8[%c0_17, %c1_18] : memref<8x226xbf16, #tpu.memory_space<vmem>>, vector<8x192xbf16>
    %cst_19 = arith.constant dense<0.000000e+00> : vector<8x192xf32>
    %22 = tpu.matmul %20, %21, %cst_19 {dimension_numbers = #tpu.dot_dimension_numbers<[1], [0], [0], [1], [0, 0, 1, 1], [], []>} : vector<8x8xbf16>, vector<8x192xbf16>, vector<8x192xf32> -> vector<8x192xf32>
    %23 = arith.addf %18, %22 : vector<8x192xf32>
    %c2 = arith.constant 2 : index
    %c0_20 = arith.constant 0 : index
    %c0_21 = arith.constant 0 : index
    %24 = vector.load %arg4[%c2, %c0_20, %c0_21] : memref<9x8x8xbf16, #tpu.memory_space<vmem>>, vector<1x8x8xbf16>
    %25 = vector.shape_cast %24 : vector<1x8x8xbf16> to vector<8x8xbf16>
    %c0_22 = arith.constant 0 : index
    %c2_23 = arith.constant 2 : index
    %26 = vector.load %arg8[%c0_22, %c2_23] : memref<8x226xbf16, #tpu.memory_space<vmem>>, vector<8x192xbf16>
    %cst_24 = arith.constant dense<0.000000e+00> : vector<8x192xf32>
    %27 = tpu.matmul %25, %26, %cst_24 {dimension_numbers = #tpu.dot_dimension_numbers<[1], [0], [0], [1], [0, 0, 1, 1], [], []>} : vector<8x8xbf16>, vector<8x192xbf16>, vector<8x192xf32> -> vector<8x192xf32>
    %28 = arith.addf %23, %27 : vector<8x192xf32>
    %c3 = arith.constant 3 : index
    %c0_25 = arith.constant 0 : index
    %c0_26 = arith.constant 0 : index
    %29 = vector.load %arg4[%c3, %c0_25, %c0_26] : memref<9x8x8xbf16, #tpu.memory_space<vmem>>, vector<1x8x8xbf16>
    %30 = vector.shape_cast %29 : vector<1x8x8xbf16> to vector<8x8xbf16>
    %c0_27 = arith.constant 0 : index
    %c16 = arith.constant 16 : index
    %31 = vector.load %arg8[%c0_27, %c16] : memref<8x226xbf16, #tpu.memory_space<vmem>>, vector<8x192xbf16>
    %cst_28 = arith.constant dense<0.000000e+00> : vector<8x192xf32>
    %32 = tpu.matmul %30, %31, %cst_28 {dimension_numbers = #tpu.dot_dimension_numbers<[1], [0], [0], [1], [0, 0, 1, 1], [], []>} : vector<8x8xbf16>, vector<8x192xbf16>, vector<8x192xf32> -> vector<8x192xf32>
    %33 = arith.addf %28, %32 : vector<8x192xf32>
    %c4 = arith.constant 4 : index
    %c0_29 = arith.constant 0 : index
    %c0_30 = arith.constant 0 : index
    %34 = vector.load %arg4[%c4, %c0_29, %c0_30] : memref<9x8x8xbf16, #tpu.memory_space<vmem>>, vector<1x8x8xbf16>
    %35 = vector.shape_cast %34 : vector<1x8x8xbf16> to vector<8x8xbf16>
    %c0_31 = arith.constant 0 : index
    %c17 = arith.constant 17 : index
    %36 = vector.load %arg8[%c0_31, %c17] : memref<8x226xbf16, #tpu.memory_space<vmem>>, vector<8x192xbf16>
    %cst_32 = arith.constant dense<0.000000e+00> : vector<8x192xf32>
    %37 = tpu.matmul %35, %36, %cst_32 {dimension_numbers = #tpu.dot_dimension_numbers<[1], [0], [0], [1], [0, 0, 1, 1], [], []>} : vector<8x8xbf16>, vector<8x192xbf16>, vector<8x192xf32> -> vector<8x192xf32>
    %38 = arith.addf %33, %37 : vector<8x192xf32>
    %c5 = arith.constant 5 : index
    %c0_33 = arith.constant 0 : index
    %c0_34 = arith.constant 0 : index
    %39 = vector.load %arg4[%c5, %c0_33, %c0_34] : memref<9x8x8xbf16, #tpu.memory_space<vmem>>, vector<1x8x8xbf16>
    %40 = vector.shape_cast %39 : vector<1x8x8xbf16> to vector<8x8xbf16>
    %c0_35 = arith.constant 0 : index
    %c18 = arith.constant 18 : index
    %41 = vector.load %arg8[%c0_35, %c18] : memref<8x226xbf16, #tpu.memory_space<vmem>>, vector<8x192xbf16>
    %cst_36 = arith.constant dense<0.000000e+00> : vector<8x192xf32>
    %42 = tpu.matmul %40, %41, %cst_36 {dimension_numbers = #tpu.dot_dimension_numbers<[1], [0], [0], [1], [0, 0, 1, 1], [], []>} : vector<8x8xbf16>, vector<8x192xbf16>, vector<8x192xf32> -> vector<8x192xf32>
    %43 = arith.addf %38, %42 : vector<8x192xf32>
    %c6 = arith.constant 6 : index
    %c0_37 = arith.constant 0 : index
    %c0_38 = arith.constant 0 : index
    %44 = vector.load %arg4[%c6, %c0_37, %c0_38] : memref<9x8x8xbf16, #tpu.memory_space<vmem>>, vector<1x8x8xbf16>
    %45 = vector.shape_cast %44 : vector<1x8x8xbf16> to vector<8x8xbf16>
    %c0_39 = arith.constant 0 : index
    %c32 = arith.constant 32 : index
    %46 = vector.load %arg8[%c0_39, %c32] : memref<8x226xbf16, #tpu.memory_space<vmem>>, vector<8x192xbf16>
    %cst_40 = arith.constant dense<0.000000e+00> : vector<8x192xf32>
    %47 = tpu.matmul %45, %46, %cst_40 {dimension_numbers = #tpu.dot_dimension_numbers<[1], [0], [0], [1], [0, 0, 1, 1], [], []>} : vector<8x8xbf16>, vector<8x192xbf16>, vector<8x192xf32> -> vector<8x192xf32>
    %48 = arith.addf %43, %47 : vector<8x192xf32>
    %c7 = arith.constant 7 : index
    %c0_41 = arith.constant 0 : index
    %c0_42 = arith.constant 0 : index
    %49 = vector.load %arg4[%c7, %c0_41, %c0_42] : memref<9x8x8xbf16, #tpu.memory_space<vmem>>, vector<1x8x8xbf16>
    %50 = vector.shape_cast %49 : vector<1x8x8xbf16> to vector<8x8xbf16>
    %c0_43 = arith.constant 0 : index
    %c33 = arith.constant 33 : index
    %51 = vector.load %arg8[%c0_43, %c33] : memref<8x226xbf16, #tpu.memory_space<vmem>>, vector<8x192xbf16>
    %cst_44 = arith.constant dense<0.000000e+00> : vector<8x192xf32>
    %52 = tpu.matmul %50, %51, %cst_44 {dimension_numbers = #tpu.dot_dimension_numbers<[1], [0], [0], [1], [0, 0, 1, 1], [], []>} : vector<8x8xbf16>, vector<8x192xbf16>, vector<8x192xf32> -> vector<8x192xf32>
    %53 = arith.addf %48, %52 : vector<8x192xf32>
    %c8 = arith.constant 8 : index
    %c0_45 = arith.constant 0 : index
    %c0_46 = arith.constant 0 : index
    %54 = vector.load %arg4[%c8, %c0_45, %c0_46] : memref<9x8x8xbf16, #tpu.memory_space<vmem>>, vector<1x8x8xbf16>
    %55 = vector.shape_cast %54 : vector<1x8x8xbf16> to vector<8x8xbf16>
    %c0_47 = arith.constant 0 : index
    %c34 = arith.constant 34 : index
    %56 = vector.load %arg8[%c0_47, %c34] : memref<8x226xbf16, #tpu.memory_space<vmem>>, vector<8x192xbf16>
    %cst_48 = arith.constant dense<0.000000e+00> : vector<8x192xf32>
    %57 = tpu.matmul %55, %56, %cst_48 {dimension_numbers = #tpu.dot_dimension_numbers<[1], [0], [0], [1], [0, 0, 1, 1], [], []>} : vector<8x8xbf16>, vector<8x192xbf16>, vector<8x192xf32> -> vector<8x192xf32>
    %58 = arith.addf %53, %57 : vector<8x192xf32>
    %59 = tpu.iota {dimensions = array<i32: 1>} : vector<8x192xi32>
    %c16_i32 = arith.constant 16 : i32
    %c0_i32 = arith.constant 0 : i32
    %60 = arith.cmpi eq, %c16_i32, %c0_i32 : i32
    %c1_i32 = arith.constant 1 : i32
    %61 = arith.select %60, %c1_i32, %c16_i32 : i32
    %62 = vector.broadcast %61 : i32 to vector<8x192xi32>
    %63 = arith.remsi %59, %62 : vector<8x192xi32>
    %c0_i32_49 = arith.constant 0 : i32
    %64 = vector.broadcast %c0_i32_49 : i32 to vector<8x192xi32>
    %65 = arith.cmpi ne, %63, %64 : vector<8x192xi32>
    %c0_i32_50 = arith.constant 0 : i32
    %66 = vector.broadcast %c0_i32_50 : i32 to vector<8x192xi32>
    %67 = arith.cmpi slt, %63, %66 : vector<8x192xi32>
    %c0_i32_51 = arith.constant 0 : i32
    %68 = arith.cmpi slt, %61, %c0_i32_51 : i32
    %69 = vector.broadcast %68 : i1 to vector<8x192xi1>
    %70 = vector.broadcast %69 : vector<8x192xi1> to vector<8x192xi1>
    %71 = arith.xori %67, %70 : vector<8x192xi1>
    %72 = arith.andi %71, %65 : vector<8x192xi1>
    %73 = vector.broadcast %61 : i32 to vector<8x192xi32>
    %74 = arith.addi %63, %73 : vector<8x192xi32>
    %75 = arith.select %72, %74, %63 : vector<8x192xi1>, vector<8x192xi32>
    %c12_i32 = arith.constant 12 : i32
    %76 = vector.broadcast %c12_i32 : i32 to vector<8x192xi32>
    %77 = arith.cmpi slt, %75, %76 : vector<8x192xi32>
    %cst_52 = arith.constant 0.000000e+00 : f32
    %78 = vector.broadcast %cst_52 : f32 to vector<8x192xf32>
    %79 = arith.select %77, %58, %78 : vector<8x192xi1>, vector<8x192xf32>
    %cst_53 = arith.constant dense<0.000000e+00> : vector<8xf32>
    %80 = vector.multi_reduction <add>, %79, %cst_53 [1] : vector<8x192xf32> to vector<8xf32>
    %81 = vector.shape_cast %80 : vector<8xf32> to vector<8x1xf32>
    %82 = arith.mulf %79, %79 : vector<8x192xf32>
    %cst_54 = arith.constant dense<0.000000e+00> : vector<8xf32>
    %83 = vector.multi_reduction <add>, %82, %cst_54 [1] : vector<8x192xf32> to vector<8xf32>
    %84 = vector.shape_cast %83 : vector<8xf32> to vector<8x1xf32>
    %c0_55 = arith.constant 0 : index
    %c0_56 = arith.constant 0 : index
    %c0_57 = arith.constant 0 : index
    %85 = vector.load %arg6[%c0_55, %c0_56, %c0_57] : memref<1x8x1xf32, #tpu.memory_space<vmem>>, vector<1x8x1xf32>
    %86 = vector.shape_cast %85 : vector<1x8x1xf32> to vector<8x1xf32>
    %87 = vector.shape_cast %81 : vector<8x1xf32> to vector<1x8x1xf32>
    tpu.vector_store %arg6[%c0_55, %c0_56, %c0_57], %87 {strides = array<i32>} : memref<1x8x1xf32, #tpu.memory_space<vmem>>, vector<1x8x1xf32>,
    %c0_58 = arith.constant 0 : index
    %c0_59 = arith.constant 0 : index
    %c0_60 = arith.constant 0 : index
    %88 = vector.load %arg7[%c0_58, %c0_59, %c0_60] : memref<1x8x1xf32, #tpu.memory_space<vmem>>, vector<1x8x1xf32>
    %89 = vector.shape_cast %88 : vector<1x8x1xf32> to vector<8x1xf32>
    %90 = vector.shape_cast %84 : vector<8x1xf32> to vector<1x8x1xf32>
    tpu.vector_store %arg7[%c0_58, %c0_59, %c0_60], %90 {strides = array<i32>} : memref<1x8x1xf32, #tpu.memory_space<vmem>>, vector<1x8x1xf32>,
    %91 = arith.truncf %58 : vector<8x192xf32> to vector<8x192xbf16>
    %c0_61 = arith.constant 0 : index
    %c0_62 = arith.constant 0 : index
    %c0_63 = arith.constant 0 : index
    %92 = vector.load %arg5[%c0_61, %c0_62, %c0_63] : memref<1x8x192xbf16, #tpu.memory_space<vmem>>, vector<1x8x192xbf16>
    %93 = vector.shape_cast %92 : vector<1x8x192xbf16> to vector<8x192xbf16>
    %94 = vector.shape_cast %91 : vector<8x192xbf16> to vector<1x8x192xbf16>
    tpu.vector_store %arg5[%c0_61, %c0_62, %c0_63], %94 {strides = array<i32>} : memref<1x8x192xbf16, #tpu.memory_space<vmem>>, vector<1x8x192xbf16>,
    return
  }
  func.func @transform_0(%arg0: i32) -> (i32, i32, i32) {
    %c0_i32 = arith.constant 0 : i32
    %c0_i32_0 = arith.constant 0 : i32
    %c0_i32_1 = arith.constant 0 : i32
    return %arg0, %c0_i32, %c0_i32_0 : i32, i32, i32
  }
  func.func @transform_1(%arg0: i32) -> (i32, i32) {
    %c0_i32 = arith.constant 0 : i32
    %c0_i32_0 = arith.constant 0 : i32
    %c0_i32_1 = arith.constant 0 : i32
    return %c0_i32, %c0_i32_0 : i32, i32
  }
  func.func @transform_2(%arg0: i32) -> (i32, i32) {
    %c0_i32 = arith.constant 0 : i32
    %c0_i32_0 = arith.constant 0 : i32
    %c0_i32_1 = arith.constant 0 : i32
    return %c0_i32, %c0_i32_0 : i32, i32
  }
  func.func @transform_3(%arg0: i32) -> (i32, i32, i32) {
    %c0_i32 = arith.constant 0 : i32
    %c0_i32_0 = arith.constant 0 : i32
    %c0_i32_1 = arith.constant 0 : i32
    %c0_i32_2 = arith.constant 0 : i32
    return %c0_i32, %c0_i32_0, %c0_i32_1 : i32, i32, i32
  }
  func.func @transform_4(%arg0: i32) -> (i32, i32, i32) {
    %c0_i32 = arith.constant 0 : i32
    %c0_i32_0 = arith.constant 0 : i32
    %c0_i32_1 = arith.constant 0 : i32
    return %arg0, %c0_i32, %c0_i32_0 : i32, i32, i32
  }
  func.func @transform_5(%arg0: i32) -> (i32, i32, i32) {
    %c0_i32 = arith.constant 0 : i32
    %c0_i32_0 = arith.constant 0 : i32
    %c0_i32_1 = arith.constant 0 : i32
    return %arg0, %c0_i32, %c0_i32_0 : i32, i32, i32
  }
  func.func @transform_6(%arg0: i32) -> (i32, i32, i32) {
    %c0_i32 = arith.constant 0 : i32
    %c0_i32_0 = arith.constant 0 : i32
    %c0_i32_1 = arith.constant 0 : i32
    return %arg0, %c0_i32, %c0_i32_0 : i32, i32, i32
  }
}

module attributes {stable_mosaic.version = 11 : i64} {
  func.func @bn_relu_kernel(%arg0: i32, %arg1: memref<1x8x192xbf16, #tpu.memory_space<vmem>>, %arg2: memref<8x1xf32, #tpu.memory_space<vmem>>, %arg3: memref<8x1xf32, #tpu.memory_space<vmem>>, %arg4: memref<1x8x192xf32, #tpu.memory_space<vmem>>) attributes {dimension_semantics = [#tpu.dimension_semantics<parallel>], iteration_bounds = array<i64: 2>, scalar_prefetch = 0 : i64, scratch_operands = 0 : i64, tpu.core_type = #tpu.core_type<tc>, window_params = [{transform_indices = @transform_0, window_bounds = array<i64: 1, 8, 192>}, {pipeline_mode = #tpu.pipeline_mode<synchronous>, transform_indices = @transform_1, window_bounds = array<i64: 8, 1>}, {pipeline_mode = #tpu.pipeline_mode<synchronous>, transform_indices = @transform_2, window_bounds = array<i64: 8, 1>}, {transform_indices = @transform_3, window_bounds = array<i64: 1, 8, 192>}]} {
    %c0 = arith.constant 0 : index
    %c0_0 = arith.constant 0 : index
    %c0_1 = arith.constant 0 : index
    %0 = vector.load %arg1[%c0, %c0_0, %c0_1] : memref<1x8x192xbf16, #tpu.memory_space<vmem>>, vector<1x8x192xbf16>
    %1 = vector.shape_cast %0 : vector<1x8x192xbf16> to vector<8x192xbf16>
    %2 = arith.extf %1 : vector<8x192xbf16> to vector<8x192xf32>
    %c0_2 = arith.constant 0 : index
    %c0_3 = arith.constant 0 : index
    %3 = vector.load %arg2[%c0_2, %c0_3] : memref<8x1xf32, #tpu.memory_space<vmem>>, vector<8x1xf32>
    %4 = vector.broadcast %3 : vector<8x1xf32> to vector<8x192xf32>
    %5 = arith.mulf %2, %4 : vector<8x192xf32>
    %c0_4 = arith.constant 0 : index
    %c0_5 = arith.constant 0 : index
    %6 = vector.load %arg3[%c0_4, %c0_5] : memref<8x1xf32, #tpu.memory_space<vmem>>, vector<8x1xf32>
    %7 = vector.broadcast %6 : vector<8x1xf32> to vector<8x192xf32>
    %8 = arith.addf %5, %7 : vector<8x192xf32>
    %cst = arith.constant 0.000000e+00 : f32
    %9 = vector.broadcast %cst : f32 to vector<8x192xf32>
    %10 = arith.maximumf %8, %9 : vector<8x192xf32>
    %c0_6 = arith.constant 0 : index
    %c0_7 = arith.constant 0 : index
    %c0_8 = arith.constant 0 : index
    %11 = vector.load %arg4[%c0_6, %c0_7, %c0_8] : memref<1x8x192xf32, #tpu.memory_space<vmem>>, vector<1x8x192xf32>
    %12 = vector.shape_cast %11 : vector<1x8x192xf32> to vector<8x192xf32>
    %13 = vector.shape_cast %10 : vector<8x192xf32> to vector<1x8x192xf32>
    tpu.vector_store %arg4[%c0_6, %c0_7, %c0_8], %13 {strides = array<i32>} : memref<1x8x192xf32, #tpu.memory_space<vmem>>, vector<1x8x192xf32>,
    return
  }
  func.func @transform_0(%arg0: i32) -> (i32, i32, i32) {
    %c0_i32 = arith.constant 0 : i32
    %c0_i32_0 = arith.constant 0 : i32
    %c0_i32_1 = arith.constant 0 : i32
    return %arg0, %c0_i32, %c0_i32_0 : i32, i32, i32
  }
  func.func @transform_1(%arg0: i32) -> (i32, i32) {
    %c0_i32 = arith.constant 0 : i32
    %c0_i32_0 = arith.constant 0 : i32
    %c0_i32_1 = arith.constant 0 : i32
    return %c0_i32, %c0_i32_0 : i32, i32
  }
  func.func @transform_2(%arg0: i32) -> (i32, i32) {
    %c0_i32 = arith.constant 0 : i32
    %c0_i32_0 = arith.constant 0 : i32
    %c0_i32_1 = arith.constant 0 : i32
    return %c0_i32, %c0_i32_0 : i32, i32
  }
  func.func @transform_3(%arg0: i32) -> (i32, i32, i32) {
    %c0_i32 = arith.constant 0 : i32
    %c0_i32_0 = arith.constant 0 : i32
    %c0_i32_1 = arith.constant 0 : i32
    return %arg0, %c0_i32, %c0_i32_0 : i32, i32, i32
  }
}

</mosaic_0001>

<bundles_post_ra>
// kernel: double_conv_forward.5
= control target key start
LH: loop header
LB: loop body
LE: loop exit
PB: predicated region body
PF: predicated region fallthrough
CT: control target
= control target key end

     0   :  { %s302_s12 = smov 0   ;;  %s325_s0 = inlined_call_operand.vmem [shape: bf16[2,8,192], index: 0, kind: input, shape index: {}]   ;;  %s326_s1 = inlined_call_operand.vmem [shape: f32[8,1], index: 1, kind: input, shape index: {}]   ;;  %s327_s2 = inlined_call_operand.vmem [shape: f32[8,1], index: 2, kind: input, shape index: {}]   ;;  %s328_s3 = inlined_call_operand.vmem [shape: f32[2,8,192], index: 3, kind: output, shape index: {}]  }
   0x1 LB: > { %s250_s13 = sadd.s32 4294967295, %s279_s12   ;;  %p254_p0 = scmp.ge.s32.totalorder %s279_s12, 1  ;;  %s279_s12 = sphi %s302_s12, %s13_s12  }
   0x2   : > { %p137_p1 = scmp.lt.s32.totalorder %s279_s12, 3 }
   0x4   : > { %p138_p2 = pnand %p254_p0, %p137_p1 }
   0x5   : > { %p161_p3 = scmp.lt.s32.totalorder (!%p138_p2), %s250_s13, 1 }
   0x6   : > { %141 = sbr.rel (%p138_p2) target bundleno = 142 (0x8e), region = 32 }
   0xb   : > { %v174_v0 = vld [vmem:[%s326_s1] sm:$0xff]  ;;  %v281_v1 = vmov 0   ;;  %s330_s13 = smov (!%p161_p3, %s250_s13), 1  ;;  %vm193_vm0 = vcmask 523264  }
   0xc   : > { %272 = vset.pattern.permute.xlu0 %v281_v1  ;;  %v182_v2 = vld [vmem:[%s327_s2] sm:$0xff]  ;;  %s261_s18 = sshll.u32 %s330_s13, 3  ;;  %s262_s22 = sshll.u32 %s330_s13, 4 }
   0xd   : > { %177 = vperm.xlu0 %272, %v174_v0   ;;  %s165_s21 = scalar_lea.vmem %s325_s0, %s261_s18  ;;  %s170_s25 = scalar_lea.vmem %s328_s3, %s262_s22 }
   0xe   : > { %v171_v4 = vld [vmem:[%s165_s21] sm:$0xff] }
   0xf   : > { %v172_v5 = vunpack.c.l.bf16 %v171_v4  ;;  %v173_v6 = vunpack.c.h.bf16 %v171_v4 }
  0x15   : > { %185 = vperm.xlu0 %272, %v182_v2  }
  0x7f   : > { %v178_v3 = vpop.permute.xlu0 %177 }
  0x80   : > { %v180_v7 = vmul.f32 %v178_v3, %v172_v5  ;;  %v181_v8 = vmul.f32 %v178_v3, %v173_v6 }
  0x87   : > { %v186_v9 = vpop.permute.xlu0 %185 }
  0x88   : > { %v188_v10 = vadd.f32 %v186_v9, %v180_v7  ;;  %v189_v11 = vadd.f32 %v186_v9, %v181_v8 }
  0x8a   : > { %v190_v12 = vmax.f32 %v188_v10, 0.0  ;;  %v191_v13 = vmax.f32 %v189_v11, 0.0 }
  0x8c   : > { %192 = vst [vmem:[%s170_s25] sm:$0xff] %v190_v12 }
  0x8d   : > { %194 = vst.msk [vmem:[%s170_s25 + $0x8] sm:$0xff] %vm193_vm0, %v191_v13 }
  0x8e PF: > { %s13_s12 = sadd.s32 1, %s279_s12  }
  0x8f   : > { %p10_p4 = scmp.ge.s32.totalorder %s13_s12, 4  }
  0x91   :  { %12 = sbr.rel (!%p10_p4) target bundleno = 1 (0x1), region = 62 }

// kernel: double_conv_forward.4
= control target key start
LH: loop header
LB: loop body
LE: loop exit
PB: predicated region body
PF: predicated region fallthrough
CT: control target
= control target key end

     0   :  { %s978_s21 = smov 0   ;;  %s1078_s0 = inlined_call_operand.vmem [shape: bf16[2,8,226], index: 0, kind: input, shape index: {}]   ;;  %s1079_s1 = inlined_call_operand.vmem [shape: f32[8,1], index: 1, kind: input, shape index: {}]   ;;  %s1080_s2 = inlined_call_operand.vmem [shape: f32[8,1], index: 2, kind: input, shape index: {}]   ;;  %s1081_s3 = inlined_call_operand.vmem [shape: bf16[9,8,8], index: 3, kind: input, shape index: {}]   ;;  %s1082_s4 = inlined_call_operand.vmem [shape: bf16[2,8,192], index: 4, kind: output, shape index: {0}]   ;;  %s1083_s5 = inlined_call_operand.vmem [shape: f32[2,8,1], index: 5, kind: output, shape index: {1}]   ;;  %s1084_s6 = inlined_call_operand.vmem [shape: f32[2,8,1], index: 6, kind: output, shape index: {2}]  }
   0x1 LB: > { %s867_s22 = sadd.s32 4294967295, %s932_s21   ;;  %p871_p0 = scmp.ge.s32.totalorder %s932_s21, 1  ;;  %s932_s21 = sphi %s978_s21, %s17_s21  }
   0x2   : > { %p217_p1 = scmp.lt.s32.totalorder %s932_s21, 3 }
   0x4   : > { %p218_p2 = pnand %p871_p0, %p217_p1 }
   0x5   : > { %p255_p3 = scmp.lt.s32.totalorder (!%p218_p2), %s867_s22, 1  ;;  %s935_s7 = smov (!%p218_p2), 112  }
   0x6   : > { %221 = sbr.rel (%p218_p2) target bundleno = 597 (0x255), region = 36  ;;  %s936_s8 = smov (!%p218_p2), 126  }
   0x7   : > { %s937_s9 = smov (!%p218_p2), 127   ;;  %s938_s10 = smov (!%p218_p2), 111  }
   0x8   : > { %s939_s11 = smov (!%p218_p2), 96   ;;  %s940_s12 = smov (!%p218_p2), 95  }
   0x9   : > { %s941_s13 = smov (!%p218_p2), 110   ;;  %s942_s14 = smov (!%p218_p2), 94  }
   0xb   : > { %v277_v0 = vld [vmem:[%s1079_s1] sm:$0xff]  ;;  %v934_v1 = vmov 0   ;;  %s1086_s22 = smov (!%p255_p3, %s867_s22), 1  ;;  %vm296_vm0 = vcmask 1043456   ;;  %vm297_vm1 = vcmask 801796   ;;  %vm315_vm3 = vcmask 64512  }
   0xc   : > { %925 = vset.pattern.permute.xlu0 %v934_v1  ;;  %v285_v2 = vld [vmem:[%s1080_s2] sm:$0xff]  ;;  %s992_s27 = sshll.u32 %s1086_s22, 3  ;;  %vm298_vm2 = vmor %vm297_vm1, %vm296_vm0  ;;  %vm392_vm4 = vcmask 1031168   ;;  %vm313_vm5 = vcmask 1039360   ;;  %vm482_vm6 = vcmask 908288   ;;  %vm437_vm7 = vcmask 916480  }
   0xd   : > { %280 = vperm.xlu0 %925, %v277_v0   ;;  %s259_s30 = scalar_lea.vmem %s1078_s0, %s992_s27  ;;  %v300_v22 = vld [vmem:[%s1081_s3] sm:$0xf]  ;;  %v878_v35 = vld [vmem:[%s1081_s3 + $0x4] sm:$0xf]  ;;  %v886_v47 = vld [vmem:[%s1081_s3 + $0xc] sm:$0xf]  ;;  %s268_s16 = scalar_lea.vmem %s1083_s5, %s992_s27 }
   0xe   : > { %v274_v4 = vld [vmem:[%s259_s30] sm:$0xff]  ;;  %vm617_vm8 = vcmask 777216   ;;  %vm527_vm9 = vcmask 900096   ;;  %v883_v56 = vld [vmem:[%s1081_s3 + $0x8] sm:$0xf]  ;;  %vm572_vm10 = vcmask 785408   ;;  %s272_s19 = scalar_lea.vmem %s1084_s6, %s992_s27 }
   0xf   : > { %v275_v5 = vunpack.c.l.bf16 %v274_v4  ;;  %v276_v6 = vunpack.c.h.bf16 %v274_v4  ;;  %v892_v61 = vld [vmem:[%s1081_s3 + $0x14] sm:$0xf]  ;;  %vm662_vm11 = vcmask 769024   ;;  %v889_v0 = vld [vmem:[%s1081_s3 + $0x10] sm:$0xf]  ;;  %vm747_vm13 = vcmask 523268  }
  0x10   : > { %v898_v4 = vld [vmem:[%s1081_s3 + $0x1c] sm:$0xf]  ;;  %vm732_vm15 = vcmask 523264   ;;  %vm748_vm1 = vmor %vm747_vm13, %vm296_vm0 }
  0x15   : > { %288 = vperm.xlu0 %925, %v285_v2  }
  0x7f   : > { %v281_v3 = vpop.permute.xlu0 %280 }
  0x80   : > { %v283_v7 = vmul.f32 %v281_v3, %v275_v5  ;;  %v284_v8 = vmul.f32 %v281_v3, %v276_v6  ;;  %v895_v5 = vld [vmem:[%s1081_s3 + $0x18] sm:$0xf]  ;;  %v901_v6 = vld [vmem:[%s1081_s3 + $0x20] sm:$0xf] }
  0x87   : > { %v289_v9 = vpop.permute.xlu0 %288 }
  0x88   : > { %v291_v10 = vadd.f32 %v289_v9, %v283_v7  ;;  %v292_v11 = vadd.f32 %v289_v9, %v284_v8 }
  0x8a   : > { %v293_v12 = vmax.f32 %v291_v10, 0.0  ;;  %v294_v13 = vmax.f32 %v292_v11, 0.0 }
  0x8c   : > { %v295_v14 = vpack.c.bf16 %v294_v13, %v293_v12 }
  0x8e   : > { %299 = vst.msk [vmem:[#allocation2] sm:$0xff] %vm298_vm2, %v295_v14  ;;  %vm743_vm2 = vcmask 7168  }
  0x95   : > { %v301_v15 = vld [vmem:[#allocation2] sm:$0xff] }
  0x96   : > { %v305_v16 = vunpack.c.l.b16 %v301_v15  ;;  %v306_v17 = vunpack.c.h.b16 %v301_v15 }
  0x98   : > { %v307_v18 = vpack.c.b16 %v305_v16, %v305_v16  ;;  %v308_v19 = vpack.c.b16 %v306_v17, %v306_v17 }
  0x9a   : > { %433 = vrot.lane.b32.xlu0 %v307_v18, %s935_s7  ;;  %388 = vrot.lane.b32.xlu2 %v307_v18, %s936_s8  ;;  %v355_v20 = vsel %vm296_vm0, %v307_v18, 0  ;;  %v358_v21 = vsel %vm296_vm0, %v308_v19, 0 }
  0x9b   : > { %309 = vrot.lane.b32.xlu1 %v307_v18, %s937_s9  ;;  %367 = vmatpush.bf16.msra.mxu2 %v355_v20 }
  0x9c   : > { %380 = vmatpush.bf16.msra.mxu3 %v358_v21 }
  0x9e   : > { %881 = vmatmul.msk.bf16.vlgmr.msra.gmra.mxu2 %vm315_vm3, %v300_v22 }
  0x9f   : > { %882 = vmatmul.msk.bf16.vlgmr.msra.gmra.mxu3 %vm315_vm3, %v300_v22 }
  0xa2   : > { %480 = vrot.lane.b32.xlu0 %v308_v19, %s938_s10  ;;  %390 = vrot.lane.b32.xlu2 %v308_v19, %s936_s8 }
  0xa3   : > { %311 = vrot.lane.b32.xlu1 %v308_v19, %s937_s9 }
  0xaa   : > { %568 = vrot.lane.b32.xlu0 %v307_v18, %s939_s11  ;;  %478 = vrot.lane.b32.xlu2 %v307_v18, %s938_s10 }
  0xab   : > { %435 = vrot.lane.b32.xlu1 %v308_v19, %s935_s7 }
  0xb2   : > { %615 = vrot.lane.b32.xlu0 %v308_v19, %s940_s12  ;;  %525 = vrot.lane.b32.xlu2 %v308_v19, %s941_s13 }
  0xb3   : > { %523 = vrot.lane.b32.xlu1 %v307_v18, %s941_s13  ;;  %s264_s13 = scalar_lea.vmem %s1082_s4, %s992_s27 }
  0xba   : > { %613 = vrot.lane.b32.xlu2 %v307_v18, %s940_s12 }
  0xbb   : > { %570 = vrot.lane.b32.xlu1 %v308_v19, %s939_s11 }
  0xc2   : > { %660 = vrot.lane.b32.xlu2 %v308_v19, %s942_s14 }
  0xc3   : > { %658 = vrot.lane.b32.xlu1 %v307_v18, %s942_s14 }
  0xf4   : > { %v389_v23 = vpop.permute.xlu2 %388 }
  0xfc   : > { %v391_v24 = vpop.permute.xlu2 %390 }
  0xfd   : > { %v393_v30 = vsel %vm392_vm4, %v389_v23, %v391_v24  ;;  %v401_v34 = vsel %vm296_vm0, %v391_v24, 0 }
  0xfe   : > { %v398_v37 = vsel %vm296_vm0, %v393_v30, 0 }
 0x104   : > { %v479_v27 = vpop.permute.xlu2 %478 }
 0x10c   : > { %v434_v25 = vpop.permute.xlu0 %433  ;;  %v526_v38 = vpop.permute.xlu2 %525 }
 0x10d   : > { %v310_v26 = vpop.permute.xlu1 %309  ;;  %v536_v45 = vsel %vm296_vm0, %v526_v38, 0 }
 0x114   : > { %v481_v28 = vpop.permute.xlu0 %480  ;;  %v614_v48 = vpop.permute.xlu2 %613 }
 0x115   : > { %v312_v29 = vpop.permute.xlu1 %311  ;;  %v483_v36 = vsel %vm482_vm6, %v479_v27, %v481_v28  ;;  %v491_v39 = vsel %vm296_vm0, %v481_v28, 0 }
 0x116   : > { %v323_v31 = vsel %vm296_vm0, %v312_v29, 0  ;;  %v314_v32 = vsel %vm313_vm5, %v310_v26, %v312_v29  ;;  %v488_v40 = vsel %vm296_vm0, %v483_v36, 0 }
 0x117   : > { %345 = vmatpush.bf16.msra.mxu1 %v323_v31  ;;  %v320_v33 = vsel %vm296_vm0, %v314_v32, 0 }
 0x118   : > { %332 = vmatpush.bf16.msra.mxu0 %v320_v33 }
 0x11a   : > { %880 = vmatmul.msk.bf16.vlgmr.msra.gmra.mxu1 %vm315_vm3, %v878_v35 }
 0x11b   : > { %423 = vmatpush.bf16.msrb.mxu1 %v401_v34  ;;  %879 = vmatmul.msk.bf16.vlgmr.msra.gmra.mxu0 %vm315_vm3, %v878_v35 }
 0x11c   : > { %410 = vmatpush.bf16.msrb.mxu0 %v398_v37  ;;  %v569_v41 = vpop.permute.xlu0 %568  ;;  %v661_v63 = vpop.permute.xlu2 %660 }
 0x11d   : > { %v436_v42 = vpop.permute.xlu1 %435  ;;  %v671_v2 = vsel %vm296_vm0, %v661_v63, 0 }
 0x11e   : > { %v446_v43 = vsel %vm296_vm0, %v436_v42, 0  ;;  %v438_v44 = vsel %vm437_vm7, %v434_v25, %v436_v42 }
 0x11f   : > { %513 = vmatpush.bf16.msra.mxu1 %v491_v39  ;;  %468 = vmatpush.bf16.msrb.mxu3 %v446_v43  ;;  %v443_v46 = vsel %vm296_vm0, %v438_v44, 0 }
 0x120   : > { %500 = vmatpush.bf16.msra.mxu0 %v488_v40  ;;  %455 = vmatpush.bf16.msrb.mxu2 %v443_v46 }
 0x121   : > { %v369_v8 = vpop.f32.mrf.mxu2 }
 0x122   : > { %888 = vmatmul.msk.bf16.vlgmr.msrb.gmra.mxu3 %vm315_vm3, %v886_v47  ;;  %v382_v7 = vpop.f32.mrf.mxu3 }
 0x123   : > { %558 = vmatpush.bf16.msra.mxu3 %v536_v45  ;;  %887 = vmatmul.msk.bf16.vlgmr.msrb.gmra.mxu2 %vm315_vm3, %v886_v47 }
 0x124   : > { %v616_v49 = vpop.permute.xlu0 %615 }
 0x125   : > { %v618_v50 = vsel %vm617_vm8, %v614_v48, %v616_v49  ;;  %v626_v51 = vsel %vm296_vm0, %v616_v49, 0  ;;  %v524_v52 = vpop.permute.xlu1 %523 }
 0x126   : > { %v623_v53 = vsel %vm296_vm0, %v618_v50, 0  ;;  %v528_v54 = vsel %vm527_vm9, %v524_v52, %v526_v38  ;;  %v701_v38 = vlaneseq }
 0x127   : > { %648 = vmatpush.bf16.msrb.mxu3 %v626_v51  ;;  %v533_v55 = vsel %vm296_vm0, %v528_v54, 0 }
 0x128   : > { %545 = vmatpush.bf16.msra.mxu2 %v533_v55  ;;  %v702_v42 = vand.u32 127, %v701_v38 }
 0x129   : > { %v371_v10 = vpop.f32.mrf.mxu2 }
 0x12a   : > { %885 = vmatmul.msk.bf16.vlgmr.msrb.gmra.mxu1 %vm315_vm3, %v883_v56  ;;  %v384_v9 = vpop.f32.mrf.mxu3  ;;  %v703_v48 = vadd.s32 128, %v702_v42  ;;  %v708_v55 = vand.u32 15, %v702_v42 }
 0x12b   : > { %884 = vmatmul.msk.bf16.vlgmr.msrb.gmra.mxu0 %vm315_vm3, %v883_v56 }
 0x12c   : > { %635 = vmatpush.bf16.msrb.mxu2 %v623_v53  ;;  %v715_v54 = vand.u32 15, %v703_v48  ;;  %vm728_vm14 = vcmp.lt.s32.totalorder %v708_v55, 12 }
 0x12d   : > { %v571_v57 = vpop.permute.xlu1 %570 }
 0x12e   : > { %v573_v58 = vsel %vm572_vm10, %v569_v41, %v571_v57  ;;  %v581_v59 = vsel %vm296_vm0, %v571_v57, 0  ;;  %vm729_vm12 = vcmp.lt.s32.totalorder %v715_v54, 12 }
 0x12f   : > { %v578_v60 = vsel %vm296_vm0, %v573_v58, 0  ;;  %603 = vmatpush.bf16.msrb.mxu1 %v581_v59 }
 0x130   : > { %590 = vmatpush.bf16.msrb.mxu0 %v578_v60 }
 0x132   : > { %894 = vmatmul.msk.bf16.vlgmr.msra.gmra.mxu3 %vm315_vm3, %v892_v61 }
 0x133   : > { %893 = vmatmul.msk.bf16.vlgmr.msra.gmra.mxu2 %vm315_vm3, %v892_v61 }
 0x135   : > { %v659_v62 = vpop.permute.xlu1 %658 }
 0x136   : > { %v663_v1 = vsel %vm662_vm11, %v659_v62, %v661_v63 }
 0x137   : > { %v668_v3 = vsel %vm296_vm0, %v663_v1, 0 }
 0x13a   : > { %891 = vmatmul.msk.bf16.vlgmr.msra.gmra.mxu1 %vm315_vm3, %v889_v0 }
 0x13b   : > { %693 = vmatpush.bf16.msra.mxu1 %v671_v2  ;;  %890 = vmatmul.msk.bf16.vlgmr.msra.gmra.mxu0 %vm315_vm3, %v889_v0 }
 0x13c   : > { %680 = vmatpush.bf16.msra.mxu0 %v668_v3 }
 0x142   : > { %900 = vmatmul.msk.bf16.vlgmr.msrb.gmra.mxu3 %vm315_vm3, %v898_v4 }
 0x143   : > { %899 = vmatmul.msk.bf16.vlgmr.msrb.gmra.mxu2 %vm315_vm3, %v898_v4 }
 0x14a   : > { %897 = vmatmul.msk.bf16.vlgmr.msrb.gmra.mxu1 %vm315_vm3, %v895_v5 }
 0x14b   : > { %896 = vmatmul.msk.bf16.vlgmr.msrb.gmra.mxu0 %vm315_vm3, %v895_v5 }
 0x15a   : > { %903 = vmatmul.msk.bf16.vlgmr.msra.gmra.mxu1 %vm315_vm3, %v901_v6 }
 0x15b   : > { %902 = vmatmul.msk.bf16.vlgmr.msra.gmra.mxu0 %vm315_vm3, %v901_v6 }
 0x197   : > { %v347_v11 = vpop.f32.mrf.mxu1 }
 0x198   : > { %v334_v12 = vpop.f32.mrf.mxu0  ;;  %v383_v31 = vadd.f32 %v382_v7, %v347_v11 }
 0x199   : > { %v370_v32 = vadd.f32 %v369_v8, %v334_v12 }
 0x19f   : > { %v349_v13 = vpop.f32.mrf.mxu1 }
 0x1a0   : > { %v336_v14 = vpop.f32.mrf.mxu0 }
 0x1a5   : > { %v470_v15 = vpop.f32.mrf.mxu3 }
 0x1a6   : > { %v457_v16 = vpop.f32.mrf.mxu2 }
 0x1a7   : > { %v425_v17 = vpop.f32.mrf.mxu1 }
 0x1a8   : > { %v412_v18 = vpop.f32.mrf.mxu0  ;;  %v430_v34 = vadd.f32 %v425_v17, %v383_v31 }
 0x1a9   : > { %v429_v36 = vadd.f32 %v412_v18, %v370_v32 }
 0x1aa   : > { %v475_v40 = vadd.f32 %v470_v15, %v430_v34 }
 0x1ab   : > { %v474_v41 = vadd.f32 %v457_v16, %v429_v36 }
 0x1ad   : > { %v472_v19 = vpop.f32.mrf.mxu3 }
 0x1ae   : > { %v459_v20 = vpop.f32.mrf.mxu2 }
 0x1af   : > { %v427_v21 = vpop.f32.mrf.mxu1 }
 0x1b0   : > { %v414_v22 = vpop.f32.mrf.mxu0 }
 0x1b5   : > { %v560_v23 = vpop.f32.mrf.mxu3 }
 0x1b6   : > { %v547_v24 = vpop.f32.mrf.mxu2 }
 0x1b7   : > { %v515_v25 = vpop.f32.mrf.mxu1 }
 0x1b8   : > { %v502_v26 = vpop.f32.mrf.mxu0  ;;  %v520_v43 = vadd.f32 %v515_v25, %v475_v40 }
 0x1b9   : > { %v519_v44 = vadd.f32 %v502_v26, %v474_v41 }
 0x1ba   : > { %v565_v49 = vadd.f32 %v560_v23, %v520_v43 }
 0x1bb   : > { %v564_v51 = vadd.f32 %v547_v24, %v519_v44 }
 0x1bd   : > { %v562_v27 = vpop.f32.mrf.mxu3 }
 0x1be   : > { %v549_v28 = vpop.f32.mrf.mxu2 }
 0x1bf   : > { %v517_v29 = vpop.f32.mrf.mxu1 }
 0x1c0   : > { %v504_v30 = vpop.f32.mrf.mxu0 }
 0x1c5   : > { %v650_v33 = vpop.f32.mrf.mxu3 }
 0x1c6   : > { %v637_v35 = vpop.f32.mrf.mxu2 }
 0x1c7   : > { %v605_v37 = vpop.f32.mrf.mxu1 }
 0x1c8   : > { %v592_v39 = vpop.f32.mrf.mxu0  ;;  %v610_v52 = vadd.f32 %v605_v37, %v565_v49 }
 0x1c9   : > { %v609_v53 = vadd.f32 %v592_v39, %v564_v51 }
 0x1ca   : > { %v655_v56 = vadd.f32 %v650_v33, %v610_v52 }
 0x1cb   : > { %v654_v57 = vadd.f32 %v637_v35, %v609_v53 }
 0x1cd   : > { %v652_v45 = vpop.f32.mrf.mxu3 }
 0x1ce   : > { %v639_v46 = vpop.f32.mrf.mxu2 }
 0x1cf   : > { %v607_v47 = vpop.f32.mrf.mxu1 }
 0x1d0   : > { %v594_v50 = vpop.f32.mrf.mxu0 }
 0x1d7   : > { %v695_v58 = vpop.f32.mrf.mxu1 }
 0x1d8   : > { %v700_v59 = vadd.f32 %v695_v58, %v655_v56  ;;  %v682_v60 = vpop.f32.mrf.mxu0 }
 0x1d9   : > { %v699_v61 = vadd.f32 %v682_v60, %v654_v57 }
 0x1da   : > { %v731_v62 = vsel %vm729_vm12, %v700_v59, 0.0 }
 0x1db   : > { %v738_v63 = vmul.f32 %v731_v62, %v731_v62  ;;  %v746_v0 = vpack.c.bf16 %v700_v59, %v699_v61  ;;  %v730_v1 = vsel %vm728_vm14, %v699_v61, 0.0  ;;  %v733_v2 = vsel %vm732_vm15, %v731_v62, 0.0 }
 0x1dc   : > { %v734_v3 = vadd.f32 %v733_v2, %v730_v1  ;;  %v737_v4 = vmul.f32 %v730_v1, %v730_v1 }
 0x1dd   : > { %749 = vst.msk [vmem:[%s264_s13] sm:$0xff] %vm748_vm1, %v746_v0  ;;  %v739_v5 = vsel %vm732_vm15, %v738_v63, 0.0 }
 0x1de   : > { %735 = vadd.xlane.f32.xlu0 %v734_v3  ;;  %v740_v6 = vadd.f32 %v739_v5, %v737_v4 }
 0x1df   : > { %v697_v7 = vpop.f32.mrf.mxu1 }
 0x1e0   : > { %v684_v8 = vpop.f32.mrf.mxu0  ;;  %741 = vadd.xlane.f32.xlu1 %v740_v6 }
 0x251   : > { %v736_v9 = vpop.xlane.xlu0 %735 }
 0x252   : > { %744 = vst.msk [vmem:[%s268_s16] sm:$0xff] %vm743_vm2, %v736_v9 }
 0x253   : > { %v742_v10 = vpop.xlane.xlu1 %741 }
 0x254   : > { %745 = vst.msk [vmem:[%s272_s19] sm:$0xff] %vm743_vm2, %v742_v10 }
 0x255 PF: > { %s17_s21 = sadd.s32 1, %s932_s21  }
 0x256   : > { %p14_p4 = scmp.ge.s32.totalorder %s17_s21, 4  }
 0x258   :  { %16 = sbr.rel (!%p14_p4) target bundleno = 1 (0x1), region = 98 }

// kernel: double_conv_forward.3
= control target key start
LH: loop header
LB: loop body
LE: loop exit
PB: predicated region body
PF: predicated region fallthrough
CT: control target
= control target key end

     0   :  { %s951_s15 = smov 0   ;;  %s1059_s0 = inlined_call_operand.vmem [shape: bf16[2,4,258], index: 0, kind: input, shape index: {}]   ;;  %s1060_s1 = inlined_call_operand.vmem [shape: bf16[9,8,4], index: 1, kind: input, shape index: {}]   ;;  %s1061_s2 = inlined_call_operand.vmem [shape: bf16[2,8,226], index: 2, kind: output, shape index: {0}]   ;;  %s1062_s3 = inlined_call_operand.vmem [shape: f32[2,8,1], index: 3, kind: output, shape index: {1}]   ;;  %s1063_s4 = inlined_call_operand.vmem [shape: f32[2,8,1], index: 4, kind: output, shape index: {2}]  }
   0x1 LB: > { %s852_s16 = sadd.s32 4294967295, %s915_s15   ;;  %p856_p0 = scmp.ge.s32.totalorder %s915_s15, 1  ;;  %s915_s15 = sphi %s951_s15, %s15_s15  }
   0x2   : > { %p167_p1 = scmp.lt.s32.totalorder %s915_s15, 3 }
   0x4   : > { %p168_p2 = pnand %p856_p0, %p167_p1 }
   0x5   : > { %p201_p3 = scmp.lt.s32.totalorder (!%p168_p2), %s852_s16, 1  ;;  %s917_s21 = smov (!%p168_p2), 127  }
   0x6   : > { %171 = sbr.rel (%p168_p2) target bundleno = 467 (0x1d3), region = 28  ;;  %s918_s22 = smov (!%p168_p2), 126  }
   0x7   : > { %s919_s23 = smov (!%p168_p2), 112   ;;  %s920_s24 = smov (!%p168_p2), 111  }
   0x8   : > { %s921_s25 = smov (!%p168_p2), 110   ;;  %s922_s26 = smov (!%p168_p2), 96  }
   0x9   : > { %s923_s27 = smov (!%p168_p2), 95   ;;  %s924_s28 = smov (!%p168_p2), 94  }
   0xb   : > { %s1065_s16 = smov (!%p201_p3, %s852_s16), 1  ;;  %vm240_vm0 = vcmask 1041408   ;;  %v220_v30 = vld [vmem:[%s1060_s1] sm:$0xf]  ;;  %vm236_vm1 = vcmask 31744   ;;  %vm234_vm2 = vcmask 1039360  }
   0xc   : > { %s891_s17 = smul.u32 6, %s1065_s16  ;;  %vm374_vm3 = vcmask 916480   ;;  %v862_v38 = vld [vmem:[%s1060_s1 + $0x4] sm:$0xf]  ;;  %v870_v42 = vld [vmem:[%s1060_s1 + $0xc] sm:$0xf] }
   0xd   : > { %vm322_vm4 = vcmask 1031168   ;;  %v867_v49 = vld [vmem:[%s1060_s1 + $0x8] sm:$0xf]  ;;  %vm426_vm5 = vcmask 908288   ;;  %vm478_vm6 = vcmask 900096   ;;  %vm530_vm7 = vcmask 785408  }
   0xe   : > { %s965_s20 = scalar_lea.vmem %s1059_s0, %s891_s17  ;;  %v873_v61 = vld [vmem:[%s1060_s1 + $0x10] sm:$0xf]  ;;  %v876_v62 = vld [vmem:[%s1060_s1 + $0x14] sm:$0xf]  ;;  %vm586_vm8 = vcmask 777216   ;;  %vm643_vm9 = vcmask 769024  }
   0xf   : > { %v221_v0 = vld [vmem:[%s965_s20] sm:$0xf]  ;;  %vm729_vm10 = vcmask 1043456   ;;  %vm730_vm11 = vcmask 785412   ;;  %vm733_vm15 = vcmask 798464  }
  0x10   : > { %225 = vst [vmem:[#allocation1] ss:$4 sm:$0xff] %v221_v0  ;;  %v311_v3 = vld [vmem:[%s965_s20] sm:$0xf]  ;;  %vm731_vm14 = vmor %vm730_vm11, %vm729_vm10 }
  0x11   : > { %v363_v6 = vld [vmem:[%s965_s20] sm:$0xf] }
  0x12   : > { %v415_v9 = vld [vmem:[%s965_s20] sm:$0xf] }
  0x13   : > { %v467_v12 = vld [vmem:[%s965_s20] sm:$0xf] }
  0x14   : > { %v519_v15 = vld [vmem:[%s965_s20] sm:$0xf] }
  0x15   : > { %v571_v18 = vld [vmem:[%s965_s20] sm:$0x3f] }
  0x16   : > { %v628_v21 = vld [vmem:[%s965_s20] sm:$0x3f] }
  0x17   : > { %v226_v1 = vld.sshfl [vmem:[#allocation1] sm:$0xff pattern:$0x73625140]  ;;  %v228_v2 = vld.sshfl [vmem:[#allocation1 + $0x8] sm:$0xff pattern:$0x73625140] }
  0x18   : > { %230 = vrot.lane.b32.xlu0 %v226_v1, %s917_s21  ;;  %273 = vst [vmem:[#allocation1] ss:$4 sm:$0xff] %v221_v0 }
  0x1f   : > { %v274_v4 = vld.sshfl [vmem:[#allocation1] sm:$0xff pattern:$0x73625140]  ;;  %v275_v5 = vld.sshfl [vmem:[#allocation1 + $0x8] sm:$0xff pattern:$0x73625140] }
  0x20   : > { %232 = vrot.lane.b32.xlu0 %v228_v2, %s917_s21  ;;  %313 = vst [vmem:[#allocation1] ss:$4 sm:$0xff] %v311_v3  ;;  %v281_v28 = vsel %vm240_vm0, %v275_v5, 0  ;;  %v279_v29 = vsel %vm240_vm0, %v274_v4, 0 }
  0x21   : > { %303 = vmatpush.bf16.msra.mxu3 %v281_v28  ;;  %290 = vmatpush.bf16.msra.mxu2 %v279_v29 }
  0x24   : > { %866 = vmatmul.msk.bf16.vlgmr.msra.gmra.mxu3 %vm236_vm1, %v220_v30  ;;  %865 = vmatmul.msk.bf16.vlgmr.msra.gmra.mxu2 %vm236_vm1, %v220_v30 }
  0x27   : > { %v314_v7 = vld.sshfl [vmem:[#allocation1] sm:$0xff pattern:$0x73625140]  ;;  %v316_v8 = vld.sshfl [vmem:[#allocation1 + $0x8] sm:$0xff pattern:$0x73625140] }
  0x28   : > { %318 = vrot.lane.b32.xlu1 %v314_v7, %s918_s22  ;;  %365 = vst [vmem:[#allocation1] ss:$4 sm:$0xff] %v363_v6  ;;  %v879_v7 = vld [vmem:[%s1060_s1 + $0x18] sm:$0xf] }
  0x2f   : > { %v366_v10 = vld.sshfl [vmem:[#allocation1] sm:$0xff pattern:$0x73625140]  ;;  %v368_v11 = vld.sshfl [vmem:[#allocation1 + $0x8] sm:$0xff pattern:$0x73625140] }
  0x30   : > { %320 = vrot.lane.b32.xlu1 %v316_v8, %s918_s22  ;;  %417 = vst [vmem:[#allocation1] ss:$4 sm:$0xff] %v415_v9  ;;  %370 = vrot.lane.b32.xlu2 %v366_v10, %s919_s23  ;;  %v882_v10 = vld [vmem:[%s1060_s1 + $0x1c] sm:$0xf] }
  0x37   : > { %v418_v13 = vld.sshfl [vmem:[#allocation1] sm:$0xff pattern:$0x73625140]  ;;  %v420_v14 = vld.sshfl [vmem:[#allocation1 + $0x8] sm:$0xff pattern:$0x73625140] }
  0x38   : > { %422 = vrot.lane.b32.xlu0 %v418_v13, %s920_s24  ;;  %424 = vrot.lane.b32.xlu1 %v420_v14, %s920_s24  ;;  %469 = vst [vmem:[#allocation1] ss:$4 sm:$0xff] %v467_v12 }
  0x39   : > { %372 = vrot.lane.b32.xlu2 %v368_v11, %s919_s23  ;;  %s1040_s23 = sshll.u32 %s1065_s16, 3 }
  0x3a   : > { %s218_s5 = scalar_lea.vmem %s1063_s4, %s1040_s23 }
  0x3f   : > { %v472_v16 = vld.sshfl [vmem:[#allocation1 + $0x8] sm:$0xff pattern:$0x73625140]  ;;  %v470_v17 = vld.sshfl [vmem:[#allocation1] sm:$0xff pattern:$0x73625140] }
  0x40   : > { %476 = vrot.lane.b32.xlu0 %v472_v16, %s921_s25  ;;  %521 = vst [vmem:[#allocation1] ss:$4 sm:$0xff] %v519_v15 }
  0x41   : > { %474 = vrot.lane.b32.xlu2 %v470_v17, %s921_s25 }
  0x47   : > { %v522_v19 = vld.sshfl [vmem:[#allocation1] sm:$0xff pattern:$0x73625140]  ;;  %v524_v20 = vld.sshfl [vmem:[#allocation1 + $0x8] sm:$0xff pattern:$0x73625140] }
  0x48   : > { %526 = vrot.lane.b32.xlu1 %v522_v19, %s922_s26  ;;  %573 = vst [vmem:[#allocation1] ss:$4 sm:$0xff] %v571_v18  ;;  %v885_v18 = vld [vmem:[%s1060_s1 + $0x20] sm:$0xf] }
  0x49   : > { %528 = vrot.lane.b32.xlu2 %v524_v20, %s922_s26  ;;  %s210_s26 = scalar_lea.vmem %s1061_s2, %s1040_s23 }
  0x4f   : > { %v578_v22 = vld.sshfl [vmem:[#allocation1 + $0x10] sm:$0xff pattern:$0x73625140]  ;;  %v574_v23 = vld.sshfl [vmem:[#allocation1] sm:$0xff pattern:$0x73625140] }
  0x50   : > { %584 = vrot.lane.b32.xlu1 %v578_v22, %s923_s27  ;;  %v576_v24 = vld.sshfl [vmem:[#allocation1 + $0x8] sm:$0xff pattern:$0x73625140] }
  0x51   : > { %582 = vrot.lane.b32.xlu0 %v576_v24, %s923_s27  ;;  %630 = vst [vmem:[#allocation1] ss:$4 sm:$0xff] %v628_v21  ;;  %580 = vrot.lane.b32.xlu2 %v574_v23, %s923_s27 }
  0x58   : > { %v635_v25 = vld.sshfl [vmem:[#allocation1 + $0x10] sm:$0xff pattern:$0x73625140]  ;;  %v633_v26 = vld.sshfl [vmem:[#allocation1 + $0x8] sm:$0xff pattern:$0x73625140] }
  0x59   : > { %641 = vrot.lane.b32.xlu1 %v635_v25, %s924_s28  ;;  %639 = vrot.lane.b32.xlu0 %v633_v26, %s924_s28  ;;  %v631_v27 = vld.sshfl [vmem:[#allocation1] sm:$0xff pattern:$0x73625140] }
  0x5a   : > { %637 = vrot.lane.b32.xlu2 %v631_v27, %s924_s28  ;;  %s214_s28 = scalar_lea.vmem %s1062_s3, %s1040_s23 }
  0x8a   : > { %v231_v31 = vpop.permute.xlu0 %230  ;;  %v371_v32 = vpop.permute.xlu2 %370 }
  0x92   : > { %v233_v33 = vpop.permute.xlu0 %232 }
  0x93   : > { %v245_v34 = vsel %vm240_vm0, %v233_v33, 0  ;;  %v235_v35 = vsel %vm234_vm2, %v231_v31, %v233_v33  ;;  %v373_v36 = vpop.permute.xlu2 %372 }
  0x94   : > { %267 = vmatpush.bf16.msra.mxu1 %v245_v34  ;;  %v242_v37 = vsel %vm240_vm0, %v235_v35, 0  ;;  %v383_v39 = vsel %vm240_vm0, %v373_v36, 0  ;;  %v375_v40 = vsel %vm374_vm3, %v371_v32, %v373_v36 }
  0x95   : > { %254 = vmatpush.bf16.msra.mxu0 %v242_v37  ;;  %405 = vmatpush.bf16.msrb.mxu3 %v383_v39  ;;  %v380_v41 = vsel %vm240_vm0, %v375_v40, 0 }
  0x96   : > { %392 = vmatpush.bf16.msrb.mxu2 %v380_v41 }
  0x97   : > { %864 = vmatmul.msk.bf16.vlgmr.msra.gmra.mxu1 %vm236_vm1, %v862_v38 }
  0x98   : > { %863 = vmatmul.msk.bf16.vlgmr.msra.gmra.mxu0 %vm236_vm1, %v862_v38  ;;  %872 = vmatmul.msk.bf16.vlgmr.msrb.gmra.mxu3 %vm236_vm1, %v870_v42 }
  0x99   : > { %871 = vmatmul.msk.bf16.vlgmr.msrb.gmra.mxu2 %vm236_vm1, %v870_v42 }
  0x9a   : > { %v319_v43 = vpop.permute.xlu1 %318 }
  0x9b   : > { %v475_v44 = vpop.permute.xlu2 %474 }
  0xa2   : > { %v321_v45 = vpop.permute.xlu1 %320 }
  0xa3   : > { %v331_v46 = vsel %vm240_vm0, %v321_v45, 0  ;;  %v323_v47 = vsel %vm322_vm4, %v319_v43, %v321_v45  ;;  %v529_v50 = vpop.permute.xlu2 %528  ;;  %v683_v45 = vlaneseq }
  0xa4   : > { %353 = vmatpush.bf16.msrb.mxu1 %v331_v46  ;;  %v328_v48 = vsel %vm240_vm0, %v323_v47, 0  ;;  %v539_v53 = vsel %vm240_vm0, %v529_v50, 0 }
  0xa5   : > { %340 = vmatpush.bf16.msrb.mxu0 %v328_v48 }
  0xa7   : > { %869 = vmatmul.msk.bf16.vlgmr.msrb.gmra.mxu1 %vm236_vm1, %v867_v49  ;;  %v305_v19 = vpop.f32.mrf.mxu3  ;;  %v292_v20 = vpop.f32.mrf.mxu2 }
  0xa8   : > { %868 = vmatmul.msk.bf16.vlgmr.msrb.gmra.mxu0 %vm236_vm1, %v867_v49 }
  0xaa   : > { %v423_v51 = vpop.permute.xlu0 %422  ;;  %v425_v52 = vpop.permute.xlu1 %424 }
  0xab   : > { %v427_v54 = vsel %vm426_vm5, %v423_v51, %v425_v52  ;;  %v435_v55 = vsel %vm240_vm0, %v425_v52, 0  ;;  %v581_v2 = vpop.permute.xlu2 %580 }
  0xac   : > { %v432_v56 = vsel %vm240_vm0, %v427_v54, 0  ;;  %457 = vmatpush.bf16.msra.mxu1 %v435_v55 }
  0xad   : > { %444 = vmatpush.bf16.msra.mxu0 %v432_v56 }
  0xaf   : > { %v307_v21 = vpop.f32.mrf.mxu3  ;;  %v294_v22 = vpop.f32.mrf.mxu2 }
  0xb0   : > { %561 = vmatpush.bf16.msrb.mxu1 %v539_v53 }
  0xb2   : > { %v477_v57 = vpop.permute.xlu0 %476 }
  0xb3   : > { %v487_v58 = vsel %vm240_vm0, %v477_v57, 0  ;;  %v479_v59 = vsel %vm478_vm6, %v475_v44, %v477_v57 }
  0xb4   : > { %v484_v60 = vsel %vm240_vm0, %v479_v59, 0  ;;  %509 = vmatpush.bf16.msra.mxu3 %v487_v58  ;;  %v638_v11 = vpop.permute.xlu2 %637 }
  0xb5   : > { %496 = vmatpush.bf16.msra.mxu2 %v484_v60 }
  0xb7   : > { %875 = vmatmul.msk.bf16.vlgmr.msra.gmra.mxu1 %vm236_vm1, %v873_v61  ;;  %878 = vmatmul.msk.bf16.vlgmr.msra.gmra.mxu3 %vm236_vm1, %v876_v62 }
  0xb8   : > { %874 = vmatmul.msk.bf16.vlgmr.msra.gmra.mxu0 %vm236_vm1, %v873_v61  ;;  %877 = vmatmul.msk.bf16.vlgmr.msra.gmra.mxu2 %vm236_vm1, %v876_v62 }
  0xba   : > { %v527_v63 = vpop.permute.xlu1 %526 }
  0xbb   : > { %v531_v0 = vsel %vm530_vm7, %v527_v63, %v529_v50  ;;  %v684_v50 = vand.u32 127, %v683_v45 }
  0xbc   : > { %v536_v1 = vsel %vm240_vm0, %v531_v0, 0 }
  0xbd   : > { %548 = vmatpush.bf16.msrb.mxu0 %v536_v1  ;;  %v685_v57 = vadd.s32 128, %v684_v50  ;;  %v690_v63 = vand.u32 15, %v684_v50 }
  0xbf   : > { %v697_v62 = vand.u32 15, %v685_v57  ;;  %vm710_vm13 = vcmp.lt.s32.totalorder %v690_v63, 14 }
  0xc1   : > { %vm711_vm12 = vcmp.lt.s32.totalorder %v697_v62, 14 }
  0xc2   : > { %v585_v3 = vpop.permute.xlu1 %584 }
  0xc3   : > { %v583_v4 = vpop.permute.xlu0 %582 }
  0xc4   : > { %v588_v5 = vsel %vm586_vm8, %v583_v4, %v585_v3  ;;  %v587_v6 = vsel %vm586_vm8, %v581_v2, %v583_v4 }
  0xc5   : > { %v596_v8 = vsel %vm240_vm0, %v588_v5, 0  ;;  %v593_v9 = vsel %vm240_vm0, %v587_v6, 0 }
  0xc6   : > { %605 = vmatpush.bf16.msrb.mxu2 %v593_v9  ;;  %618 = vmatpush.bf16.msrb.mxu3 %v596_v8 }
  0xc7   : > { %881 = vmatmul.msk.bf16.vlgmr.msrb.gmra.mxu1 %vm236_vm1, %v879_v7 }
  0xc8   : > { %880 = vmatmul.msk.bf16.vlgmr.msrb.gmra.mxu0 %vm236_vm1, %v879_v7 }
  0xc9   : > { %883 = vmatmul.msk.bf16.vlgmr.msrb.gmra.mxu2 %vm236_vm1, %v882_v10  ;;  %884 = vmatmul.msk.bf16.vlgmr.msrb.gmra.mxu3 %vm236_vm1, %v882_v10 }
  0xcb   : > { %v642_v12 = vpop.permute.xlu1 %641  ;;  %v640_v13 = vpop.permute.xlu0 %639 }
  0xcc   : > { %v645_v14 = vsel %vm643_vm9, %v640_v13, %v642_v12  ;;  %v644_v15 = vsel %vm643_vm9, %v638_v11, %v640_v13 }
  0xcd   : > { %v653_v16 = vsel %vm240_vm0, %v645_v14, 0  ;;  %v650_v17 = vsel %vm240_vm0, %v644_v15, 0  ;;  %vm725_vm0 = vcmask 7168  }
  0xce   : > { %662 = vmatpush.bf16.msra.mxu0 %v650_v17  ;;  %675 = vmatpush.bf16.msra.mxu1 %v653_v16 }
  0xd7   : > { %887 = vmatmul.msk.bf16.vlgmr.msra.gmra.mxu1 %vm236_vm1, %v885_v18 }
  0xd8   : > { %886 = vmatmul.msk.bf16.vlgmr.msra.gmra.mxu0 %vm236_vm1, %v885_v18  ;;  %v925_v18 = vmov 0  }
 0x114   : > { %v269_v23 = vpop.f32.mrf.mxu1 }
 0x115   : > { %v256_v24 = vpop.f32.mrf.mxu0  ;;  %v306_v46 = vadd.f32 %v305_v19, %v269_v23 }
 0x116   : > { %v293_v47 = vadd.f32 %v292_v20, %v256_v24 }
 0x11b   : > { %v407_v25 = vpop.f32.mrf.mxu3 }
 0x11c   : > { %v271_v26 = vpop.f32.mrf.mxu1  ;;  %v394_v27 = vpop.f32.mrf.mxu2 }
 0x11d   : > { %v258_v28 = vpop.f32.mrf.mxu0 }
 0x123   : > { %v409_v29 = vpop.f32.mrf.mxu3 }
 0x124   : > { %v355_v30 = vpop.f32.mrf.mxu1  ;;  %v396_v31 = vpop.f32.mrf.mxu2 }
 0x125   : > { %v342_v32 = vpop.f32.mrf.mxu0  ;;  %v360_v48 = vadd.f32 %v355_v30, %v306_v46 }
 0x126   : > { %v359_v49 = vadd.f32 %v342_v32, %v293_v47 }
 0x127   : > { %v412_v51 = vadd.f32 %v407_v25, %v360_v48 }
 0x128   : > { %v411_v52 = vadd.f32 %v394_v27, %v359_v49 }
 0x12c   : > { %v357_v33 = vpop.f32.mrf.mxu1 }
 0x12d   : > { %v344_v34 = vpop.f32.mrf.mxu0 }
 0x134   : > { %v459_v35 = vpop.f32.mrf.mxu1 }
 0x135   : > { %v446_v36 = vpop.f32.mrf.mxu0  ;;  %v464_v58 = vadd.f32 %v459_v35, %v412_v51 }
 0x136   : > { %v463_v59 = vadd.f32 %v446_v36, %v411_v52 }
 0x13a   : > { %v511_v37 = vpop.f32.mrf.mxu3 }
 0x13b   : > { %v498_v38 = vpop.f32.mrf.mxu2  ;;  %v516_v60 = vadd.f32 %v511_v37, %v464_v58 }
 0x13c   : > { %v461_v39 = vpop.f32.mrf.mxu1  ;;  %v515_v61 = vadd.f32 %v498_v38, %v463_v59 }
 0x13d   : > { %v448_v40 = vpop.f32.mrf.mxu0 }
 0x142   : > { %v513_v41 = vpop.f32.mrf.mxu3 }
 0x143   : > { %v500_v42 = vpop.f32.mrf.mxu2 }
 0x144   : > { %v563_v43 = vpop.f32.mrf.mxu1 }
 0x145   : > { %v550_v44 = vpop.f32.mrf.mxu0  ;;  %v568_v0 = vadd.f32 %v563_v43, %v516_v60 }
 0x146   : > { %v567_v1 = vadd.f32 %v550_v44, %v515_v61 }
 0x14c   : > { %v607_v53 = vpop.f32.mrf.mxu2  ;;  %v620_v54 = vpop.f32.mrf.mxu3 }
 0x14d   : > { %v565_v55 = vpop.f32.mrf.mxu1  ;;  %v552_v56 = vpop.f32.mrf.mxu0  ;;  %v624_v2 = vadd.f32 %v607_v53, %v567_v1  ;;  %v625_v3 = vadd.f32 %v620_v54, %v568_v0 }
 0x154   : > { %v622_v4 = vpop.f32.mrf.mxu3  ;;  %v609_v5 = vpop.f32.mrf.mxu2 }
 0x155   : > { %v677_v6 = vpop.f32.mrf.mxu1  ;;  %v664_v7 = vpop.f32.mrf.mxu0 }
 0x156   : > { %v682_v8 = vadd.f32 %v677_v6, %v625_v3  ;;  %v681_v9 = vadd.f32 %v664_v7, %v624_v2 }
 0x158   : > { %v713_v10 = vsel %vm711_vm12, %v682_v8, 0.0  ;;  %v728_v11 = vpack.c.bf16 %v682_v8, %v681_v9  ;;  %v712_v12 = vsel %vm710_vm13, %v681_v9, 0.0 }
 0x159   : > { %v720_v13 = vmul.f32 %v713_v10, %v713_v10  ;;  %v715_v14 = vsel %vm530_vm7, %v713_v10, 0.0  ;;  %v719_v15 = vmul.f32 %v712_v12, %v712_v12 }
 0x15a   : > { %v716_v16 = vadd.f32 %v715_v14, %v712_v12  ;;  %732 = vst.msk [vmem:[%s210_s26] sm:$0xff] %vm731_vm14, %v728_v11 }
 0x15b   : > { %v721_v17 = vsel %vm530_vm7, %v720_v13, 0.0  ;;  %734 = vst.msk [vmem:[%s210_s26 + $0x4] sm:$0xf] %vm733_vm15, %v925_v18 }
 0x15c   : > { %717 = vadd.xlane.f32.xlu0 %v716_v16  ;;  %v722_v19 = vadd.f32 %v721_v17, %v719_v15 }
 0x15d   : > { %v679_v20 = vpop.f32.mrf.mxu1  ;;  %v666_v21 = vpop.f32.mrf.mxu0 }
 0x15e   : > { %723 = vadd.xlane.f32.xlu1 %v722_v19 }
 0x1cf   : > { %v718_v22 = vpop.xlane.xlu0 %717 }
 0x1d0   : > { %726 = vst.msk [vmem:[%s214_s28] sm:$0xff] %vm725_vm0, %v718_v22 }
 0x1d1   : > { %v724_v23 = vpop.xlane.xlu1 %723 }
 0x1d2   : > { %727 = vst.msk [vmem:[%s218_s5] sm:$0xff] %vm725_vm0, %v724_v23 }
 0x1d3 PF: > { %s15_s15 = sadd.s32 1, %s915_s15  }
 0x1d4   : > { %p12_p4 = scmp.ge.s32.totalorder %s15_s15, 4  }
 0x1d6   :  { %14 = sbr.rel (!%p12_p4) target bundleno = 1 (0x1), region = 90 }

</bundles_post_ra>
